<compile_context>
chip_gen: v6e
topology: v6e:2x2x1
jax: 0.10.0
libtpu: 0.0.40
codegen_flags: <defaults>
</compile_context>

<pallas_src>
import math
import functools

import jax
import jax.numpy as jnp
from jax import lax
from jax.experimental import pallas as pl
from jax.experimental.pallas import tpu as pltpu

F32 = jnp.float32
BF16 = jnp.bfloat16


# ----------------------------------------------------------------------------
# Generation-aware sizing helpers
# ----------------------------------------------------------------------------

@functools.lru_cache(maxsize=None)
def _hw_vmem_bytes():
    """Per-core VMEM capacity; conservative 64 MiB fallback (v7x)."""
    try:
        info = pltpu.get_tpu_info()
        cap = getattr(info, 'vmem_capacity_bytes', None)
        if cap:
            return int(cap)
    except Exception:
        pass
    return 64 * 1024 * 1024


def _vmem_limit():
    return min((_hw_vmem_bytes() * 3) // 4, 96 * 1024 * 1024)


def _token_tile_target():
    # Roofline balance: v6e needs ~650+ tokens/expert-weight fetch (128 MiB VMEM
    # -> 768 fits); v7x balance ~310 but only 64 MiB VMEM -> 512.
    return 768 if _hw_vmem_bytes() > 96 * 1024 * 1024 else 512


def _tile(dim, target, mult=8):
    """Largest divisor of `dim` <= target that is a multiple of `mult` (or the
    full dim).  Never returns a tile that violates the (8,128) block rule."""
    target = max(1, min(dim, target))
    for t in range(target, 0, -1):
        if dim % t == 0 and (t % mult == 0 or t == dim):
            return t
    return dim


# ----------------------------------------------------------------------------
# Tiled matmul + bias (patch embedding)
# ----------------------------------------------------------------------------

def _matmul_bias_kernel(x_ref, w_ref, b_ref, o_ref, acc_ref):
    @pl.when(pl.program_id(2) == 0)
    def _():
        acc_ref[...] = jnp.zeros_like(acc_ref)

    acc_ref[...] += jnp.dot(x_ref[...], w_ref[...],
                            preferred_element_type=jnp.float32)

    @pl.when(pl.program_id(2) == pl.num_programs(2) - 1)
    def _():
        o_ref[...] = acc_ref[...] + b_ref[...]


def matmul_bias(x, w, b, *, tm=256, tn=256, tk=512):
    """x: (M, K) bf16, w: (K, N) bf16, b: (1, N) f32 -> (M, N) f32."""
    M, K = x.shape
    N = w.shape[1]
    tm = _tile(M, tm, 8)
    tn = _tile(N, tn, 128)
    tk = _tile(K, tk, 128)
    return pl.pallas_call(
        _matmul_bias_kernel,
        out_shape=jax.ShapeDtypeStruct((M, N), F32),
        grid=(M // tm, N // tn, K // tk),
        in_specs=[pl.BlockSpec((tm, tk), lambda i, j, k: (i, k)),
                  pl.BlockSpec((tk, tn), lambda i, j, k: (k, j)),
                  pl.BlockSpec((1, tn), lambda i, j, k: (0, j))],
        out_specs=pl.BlockSpec((tm, tn), lambda i, j, k: (i, j)),
        scratch_shapes=[pltpu.VMEM((tm, tn), F32)],
        compiler_params=pltpu.CompilerParams(
            dimension_semantics=("parallel", "parallel", "arbitrary"),
            vmem_limit_bytes=_vmem_limit()),
    )(x, w, b)


# ----------------------------------------------------------------------------
# Fully fused attention block:
#   ln1 -> QKV projection -> per-head softmax attention -> out-proj -> residual
# ----------------------------------------------------------------------------

def _attn_block_kernel(x_ref, g_ref, bln_ref, wqkv_ref, bqkv_ref,
                       wo_ref, bo_ref, o_ref, *, eps, num_heads, scale):
    x = x_ref[0]                                               # (S, D) f32
    D = x.shape[-1]
    hd = D // num_heads

    # LayerNorm (f32 math)
    mean = jnp.mean(x, axis=-1, keepdims=True)
    var = jnp.mean(jnp.square(x - mean), axis=-1, keepdims=True)
    xn = ((x - mean) * lax.rsqrt(var + eps) * g_ref[...] + bln_ref[...])

    # Single QKV projection: (S, D) @ (D, 3D)  -- qkv never leaves VMEM.
    qkv = jnp.dot(xn.astype(BF16), wqkv_ref[...],
                  preferred_element_type=jnp.float32) + bqkv_ref[...]
    q = qkv[:, :D]
    k = qkv[:, D:2 * D]
    v = qkv[:, 2 * D:]

    # Per-head attention (static unrolled loop; H is small).
    # TODO(synk): for long sequences add a flash-style query/key tiling axis
    # instead of materializing the full (S, S) score matrix per head.
    heads = []
    for h in range(num_heads):
        sl = slice(h * hd, (h + 1) * hd)
        qh = q[:, sl].astype(BF16)
        kh = k[:, sl].astype(BF16)
        vh = v[:, sl].astype(BF16)
        s = lax.dot_general(qh, kh, (((1,), (1,)), ((), ())),
                            preferred_element_type=jnp.float32) * scale
        s = s - jnp.max(s, axis=-1, keepdims=True)
        e = jnp.exp(s)
        p = e * pl.reciprocal(jnp.sum(e, axis=-1, keepdims=True), approx=True)
        heads.append(jnp.dot(p.astype(BF16), vh,
                             preferred_element_type=jnp.float32))

    # Head-concat -> one big (S, D) @ (D, D) output projection (full MXU fill).
    ctx = jnp.concatenate(heads, axis=-1)                      # (S, D) f32
    out = jnp.dot(ctx.astype(BF16), wo_ref[...],
                  preferred_element_type=jnp.float32) + bo_ref[...]
    o_ref[0] = x + out                                         # fused residual


def attention_block(x, g, bln, w_qkv, b_qkv, w_o, b_o, *, eps, num_heads):
    """x + OutProj(MHA(LayerNorm(x))).  x: (B,S,D) f32; weights bf16."""
    B, S, D = x.shape
    hd = D // num_heads
    scale = 1.0 / math.sqrt(hd)
    return pl.pallas_call(
        functools.partial(_attn_block_kernel, eps=eps,
                          num_heads=num_heads, scale=scale),
        out_shape=jax.ShapeDtypeStruct((B, S, D), F32),
        grid=(B,),
        in_specs=[pl.BlockSpec((1, S, D), lambda b: (b, 0, 0)),
                  pl.BlockSpec((1, D), lambda b: (0, 0)),
                  pl.BlockSpec((1, D), lambda b: (0, 0)),
                  pl.BlockSpec((D, 3 * D), lambda b: (0, 0)),
                  pl.BlockSpec((1, 3 * D), lambda b: (0, 0)),
                  pl.BlockSpec((D, D), lambda b: (0, 0)),
                  pl.BlockSpec((1, D), lambda b: (0, 0))],
        out_specs=pl.BlockSpec((1, S, D), lambda b: (b, 0, 0)),
        compiler_params=pltpu.CompilerParams(
            dimension_semantics=("parallel",),
            vmem_limit_bytes=_vmem_limit()),
    )(x, g, bln, w_qkv, b_qkv, w_o, b_o)


# ----------------------------------------------------------------------------
# MoE: masked dense expert mixture + residual (LN computed once outside)
# ----------------------------------------------------------------------------

def _moe_kernel(x_ref, xn_ref, w1_ref, b1_ref, w2_ref, b2_ref,
                m_ref, o_ref, acc_ref):
    e = pl.program_id(1)

    @pl.when(e == 0)
    def _():
        acc_ref[...] = jnp.zeros_like(acc_ref)

    h = jnp.dot(xn_ref[...], w1_ref[0],
                preferred_element_type=jnp.float32) + b1_ref[0]
    # TODO(synk): PyTorch nn.GELU() is exact (erf) GELU; tanh approximation is
    # used to guarantee Mosaic lowering (~1e-3 per-element difference).
    h = jax.nn.gelu(h, approximate=True)
    y = jnp.dot(h.astype(BF16), w2_ref[0],
                preferred_element_type=jnp.float32) + b2_ref[0]
    acc_ref[...] += y * m_ref[0]                               # gate mask (tm,1)

    @pl.when(e == pl.num_programs(1) - 1)
    def _():
        o_ref[...] = x_ref[...] + acc_ref[...]                 # fused residual


def moe_apply(x, xn, w1, b1, w2, b2, masks, *, tm):
    """x + sum_e masks[e] * Expert_e(xn);  xn = LayerNorm(x) precomputed (bf16).

    x: (M, D) f32; xn: (M, D) bf16; w1: (E, D, Hf) bf16; b1: (E, 1, Hf) f32;
    w2: (E, Hf, D) bf16; b2: (E, 1, D) f32; masks: (E, M, 1) f32.
    TODO(synk): dense masked mixture (each expert sees all tokens); a routed
    grouped matmul with scalar-prefetched group offsets would skip the wasted
    (1 - active/E) FLOPs at production shapes.
    """
    M, D = x.shape
    E, _, Hf = w1.shape
    tm = _tile(M, tm, 8)
    return pl.pallas_call(
        _moe_kernel,
        out_shape=jax.ShapeDtypeStruct((M, D), F32),
        grid=(M // tm, E),
        in_specs=[pl.BlockSpec((tm, D), lambda i, e: (i, 0)),
                  pl.BlockSpec((tm, D), lambda i, e: (i, 0)),
                  pl.BlockSpec((1, D, Hf), lambda i, e: (e, 0, 0)),
                  pl.BlockSpec((1, 1, Hf), lambda i, e: (e, 0, 0)),
                  pl.BlockSpec((1, Hf, D), lambda i, e: (e, 0, 0)),
                  pl.BlockSpec((1, 1, D), lambda i, e: (e, 0, 0)),
                  pl.BlockSpec((1, tm, 1), lambda i, e: (e, i, 0))],
        out_specs=pl.BlockSpec((tm, D), lambda i, e: (i, 0)),
        scratch_shapes=[pltpu.VMEM((tm, D), F32)],
        compiler_params=pltpu.CompilerParams(
            dimension_semantics=("parallel", "arbitrary"),
            vmem_limit_bytes=_vmem_limit()),
    )(x, xn, w1, b1, w2, b2, masks)


# ----------------------------------------------------------------------------
# FFN: fused LayerNorm + Linear/GELU/Linear + residual (mask-free fast path)
# ----------------------------------------------------------------------------

def _ffn_kernel(x_ref, g_ref, bln_ref, w1_ref, b1_ref, w2_ref, b2_ref, o_ref,
                *, eps):
    x = x_ref[...]
    mean = jnp.mean(x, axis=-1, keepdims=True)
    var = jnp.mean(jnp.square(x - mean), axis=-1, keepdims=True)
    xn = (x - mean) * lax.rsqrt(var + eps) * g_ref[...] + bln_ref[...]
    h = jnp.dot(xn.astype(BF16), w1_ref[...],
                preferred_element_type=jnp.float32) + b1_ref[...]
    h = jax.nn.gelu(h, approximate=True)
    y = jnp.dot(h.astype(BF16), w2_ref[...],
                preferred_element_type=jnp.float32) + b2_ref[...]
    o_ref[...] = x + y


def ffn_block(x, g, bln, w1, b1, w2, b2, *, eps, tm):
    """x + FFN(LayerNorm(x)).  w1: (D, Hf) bf16, w2: (Hf, D) bf16."""
    M, D = x.shape
    Hf = w1.shape[1]
    tm = _tile(M, tm, 8)
    return pl.pallas_call(
        functools.partial(_ffn_kernel, eps=eps),
        out_shape=jax.ShapeDtypeStruct((M, D), F32),
        grid=(M // tm,),
        in_specs=[pl.BlockSpec((tm, D), lambda i: (i, 0)),
                  pl.BlockSpec((1, D), lambda i: (0, 0)),
                  pl.BlockSpec((1, D), lambda i: (0, 0)),
                  pl.BlockSpec((D, Hf), lambda i: (0, 0)),
                  pl.BlockSpec((1, Hf), lambda i: (0, 0)),
                  pl.BlockSpec((Hf, D), lambda i: (0, 0)),
                  pl.BlockSpec((1, D), lambda i: (0, 0))],
        out_specs=pl.BlockSpec((tm, D), lambda i: (i, 0)),
        compiler_params=pltpu.CompilerParams(
            dimension_semantics=("parallel",),
            vmem_limit_bytes=_vmem_limit()),
    )(x, g, bln, w1, b1, w2, b2)


# ----------------------------------------------------------------------------
# Model glue (plain JAX around the Pallas kernels)
# ----------------------------------------------------------------------------

def extract_patches(x, p):
    """NCHW image -> (B, num_patches, C*p*p) with feature order (C, ph, pw)."""
    B, C, H, W = x.shape
    gh, gw = H // p, W // p
    x = x.reshape(B, C, gh, p, gw, p)
    x = x.transpose(0, 2, 4, 1, 3, 5)
    return x.reshape(B, gh * gw, C * p * p)


def _layernorm_jax(x, g, b, eps):
    mean = jnp.mean(x, axis=-1, keepdims=True)
    var = jnp.mean(jnp.square(x - mean), axis=-1, keepdims=True)
    return (x - mean) * lax.rsqrt(var + eps) * g + b


def _topk_masks(logits, top_k):
    # TODO(synk): AttentiveRouter body is not given in the reference source;
    # standard linear-router -> softmax -> top-k gating (unnormalized gates)
    # + load-balancing auxiliary loss is used.
    E = logits.shape[-1]
    probs = jax.nn.softmax(logits, axis=-1)
    topv, topi = lax.top_k(probs, top_k)
    onehot = jax.nn.one_hot(topi, E, dtype=F32)                # (M, k, E)
    masks = jnp.sum(onehot * topv[..., None], axis=1)          # (M, E)
    density = jnp.mean((masks > 0.0).astype(F32), axis=0)
    density_proxy = jnp.mean(probs, axis=0)
    loss = E * jnp.sum(density * density_proxy)
    return masks, loss


def encoder_forward(x, p, cfg):
    B, S, D = x.shape
    M = B * S
    eps = cfg['eps']
    token_tile = _token_tile_target()

    # --- self attention: ln1 + QKV + MHA + out-proj + residual, one kernel ---
    x = attention_block(x, p['ln1_g'], p['ln1_b'],
                        p['w_qkv'].astype(BF16), p['b_qkv'],
                        p['w_o'].astype(BF16), p['b_o'],
                        eps=eps, num_heads=cfg['num_heads'])    # (B,S,D) f32
    xf = x.reshape(M, D)

    # --- MoE block: ln2 computed ONCE (shared by routers + expert kernel) ---
    xn = _layernorm_jax(xf, p['ln2_g'], p['ln2_b'], eps)
    Es = p['shared_router_w'].shape[1]
    router_w = jnp.concatenate([p['shared_router_w'], p['image_router_w']], 1)
    router_b = jnp.concatenate([p['shared_router_b'], p['image_router_b']], 1)
    logits = xn @ router_w + router_b                           # (M, Es+Ei)
    shared_masks, shared_loss = _topk_masks(logits[:, :Es], cfg['top_k'])
    image_masks, image_loss = _topk_masks(logits[:, Es:], cfg['top_k'])
    masks_all = jnp.concatenate([shared_masks, image_masks], -1).T[:, :, None]
    xf = moe_apply(xf, xn.astype(BF16),
                   p['exp_w1'].astype(BF16), p['exp_b1'],
                   p['exp_w2'].astype(BF16), p['exp_b2'],
                   masks_all, tm=token_tile)                    # residual fused

    # --- FFN block (reference re-applies norm2 to the *new* x) ---
    xf = ffn_block(xf, p['ln2_g'], p['ln2_b'],
                   p['ffn_w1'].astype(BF16), p['ffn_b1'],
                   p['ffn_w2'].astype(BF16), p['ffn_b2'],
                   eps=eps, tm=token_tile)

    total_loss = shared_loss + image_loss
    expert_assign = [shared_masks.reshape(B, S, -1),
                     image_masks.reshape(B, S, -1)]
    return xf.reshape(B, S, D), total_loss, expert_assign


def multimodal_moe_forward(params, x_img, cfg):
    B = x_img.shape[0]
    D = cfg['embed_dim']
    Np = cfg['num_patches']
    patches = extract_patches(x_img, cfg['patch_size'])         # (B, Np, Cpp)
    x = matmul_bias(patches.reshape(B * Np, -1).astype(BF16),
                    params['patch_w'].astype(BF16), params['patch_b'])
    x = x.reshape(B, Np, D) + params['pos_embed']               # pos_drop = id

    total_router_loss = jnp.float32(0.0)
    router_outputs = []
    expert_usages = []
    for lp in params['layers']:
        x, rl, eu = encoder_forward(x, lp, cfg)
        total_router_loss = total_router_loss + rl
        router_outputs.append(eu)
        expert_usages.extend(eu)

    # Final pooled LayerNorm + head: far below one vreg -> plain JAX.
    x = jnp.mean(x, axis=1)                                     # (B, D)
    x = _layernorm_jax(x, params['norm_g'], params['norm_b'], cfg['eps'])
    logits = x @ params['head_w'] + params['head_b']
    return {'logits': logits,
            'router_loss': total_router_loss,
            'router_outputs': router_outputs,
            'expert_usages': expert_usages}


# ----------------------------------------------------------------------------
# Deterministic parameter initialization (synthetic; shapes follow __init__)
# ----------------------------------------------------------------------------

def trunc_normal(key, shape, std=0.02):
    return std * jax.random.truncated_normal(key, -2.0, 2.0, shape, jnp.float32)


def init_params(key, cfg):
    D = cfg['embed_dim']
    C = cfg['in_channels']
    P = cfg['patch_size']
    Hf = 4 * D
    E = cfg['num_shared_experts'] + cfg['num_img_experts']
    cpp = C * P * P
    keys = jax.random.split(key, 8 + cfg['num_layers'])

    conv_w = jax.random.normal(keys[0], (D, C, P, P), jnp.float32) * math.sqrt(2.0 / cpp)
    params = {
        'patch_w': conv_w.reshape(D, cpp).T,                    # (Cpp, D)
        'patch_b': jnp.zeros((1, D), jnp.float32),
        'pos_embed': trunc_normal(keys[1], (1, cfg['num_patches'], D)),
        'norm_g': jnp.ones((1, D), jnp.float32),
        'norm_b': jnp.zeros((1, D), jnp.float32),
        'head_w': trunc_normal(keys[2], (D, cfg['num_classes'])),
        'head_b': jnp.zeros((1, cfg['num_classes']), jnp.float32),
        'layers': [],
    }
    for li in range(cfg['num_layers']):
        lk = jax.random.split(keys[8 + li], 8)
        layer = {
            'ln1_g': jnp.ones((1, D), jnp.float32),
            'ln1_b': jnp.zeros((1, D), jnp.float32),
            'ln2_g': jnp.ones((1, D), jnp.float32),
            'ln2_b': jnp.zeros((1, D), jnp.float32),
            'w_qkv': trunc_normal(lk[0], (D, 3 * D)),
            'b_qkv': jnp.zeros((1, 3 * D), jnp.float32),
            'w_o': trunc_normal(lk[1], (D, D)),
            'b_o': jnp.zeros((1, D), jnp.float32),
            'shared_router_w': trunc_normal(lk[2], (D, cfg['num_shared_experts'])),
            'shared_router_b': jnp.zeros((1, cfg['num_shared_experts']), jnp.float32),
            'image_router_w': trunc_normal(lk[3], (D, cfg['num_img_experts'])),
            'image_router_b': jnp.zeros((1, cfg['num_img_experts']), jnp.float32),
            # stacked experts: shared (num_shared) then image-specific (num_img)
            # TODO(synk): Expert body not given in source; inferred standard
            # Linear(D,4D)->GELU->Linear(4D,D) MLP expert.
            'exp_w1': trunc_normal(lk[4], (E, D, Hf)),
            'exp_b1': jnp.zeros((E, 1, Hf), jnp.float32),
            'exp_w2': trunc_normal(lk[5], (E, Hf, D)),
            'exp_b2': jnp.zeros((E, 1, D), jnp.float32),
            'ffn_w1': trunc_normal(lk[6], (D, Hf)),
            'ffn_b1': jnp.zeros((1, Hf), jnp.float32),
            'ffn_w2': trunc_normal(lk[7], (Hf, D)),
            'ffn_b2': jnp.zeros((1, D), jnp.float32),
        }
        # TODO(synk): text_specific_experts / text_router exist in __init__ but
        # are never used by forward(); omitted here.
        params['layers'].append(layer)
    return params


# ----------------------------------------------------------------------------
# Main
# ----------------------------------------------------------------------------

if __name__ == "__main__":
    cfg = dict(
        img_size=16, patch_size=4, in_channels=3,
        embed_dim=64, num_heads=4,
        num_shared_experts=4, num_img_experts=2, top_k=2,
        num_layers=2, num_classes=10, eps=1e-5,
    )
    cfg['num_patches'] = (cfg['img_size'] // cfg['patch_size']) ** 2

    key = jax.random.PRNGKey(0)
    pkey, xkey = jax.random.split(key)
    params = init_params(pkey, cfg)
    x = jax.random.normal(xkey, (2, cfg['in_channels'],
                                 cfg['img_size'], cfg['img_size']), jnp.float32)

    fwd = jax.jit(functools.partial(multimodal_moe_forward, cfg=cfg))
    out = fwd(params, x)
    jax.block_until_ready(out['logits'])
    jax.block_until_ready(out['router_loss'])

    assert out['logits'].shape == (2, cfg['num_classes'])
    assert out['router_loss'].shape == ()
    assert len(out['expert_usages']) == 2 * cfg['num_layers']
    print("KERNEL_OK")
</pallas_src>

<mosaic_0001>
module attributes {stable_mosaic.version = 11 : i64} {
  func.func @_matmul_bias_kernel(%arg0: i32, %arg1: i32, %arg2: i32, %arg3: memref<32x48xbf16, #tpu.memory_space<vmem>>, %arg4: memref<48x64xbf16, #tpu.memory_space<vmem>>, %arg5: memref<1x64xf32, #tpu.memory_space<vmem>>, %arg6: memref<32x64xf32, #tpu.memory_space<vmem>>, %arg7: memref<32x64xf32, #tpu.memory_space<vmem>>) attributes {dimension_semantics = [#tpu.dimension_semantics<parallel>, #tpu.dimension_semantics<parallel>, #tpu.dimension_semantics<arbitrary>], iteration_bounds = array<i64: 1, 1, 1>, scalar_prefetch = 0 : i64, scratch_operands = 1 : i64, tpu.core_type = #tpu.core_type<tc>, window_params = [{transform_indices = @transform_0, window_bounds = array<i64: 32, 48>}, {transform_indices = @transform_1, window_bounds = array<i64: 48, 64>}, {transform_indices = @transform_2, window_bounds = array<i64: 1, 64>}, {transform_indices = @transform_3, window_bounds = array<i64: 32, 64>}]} {
    %c0_i32 = arith.constant 0 : i32
    %0 = arith.cmpi eq, %arg2, %c0_i32 : i32
    %1 = arith.extui %0 : i1 to i32
    %c0_i32_0 = arith.constant 0 : i32
    %2 = arith.cmpi ne, %1, %c0_i32_0 : i32
    scf.if %2 {
      %cst_10 = arith.constant 0.000000e+00 : f32
      %12 = vector.broadcast %cst_10 : f32 to vector<32x64xf32>
      %c0_11 = arith.constant 0 : index
      %c0_12 = arith.constant 0 : index
      %13 = vector.load %arg7[%c0_11, %c0_12] : memref<32x64xf32, #tpu.memory_space<vmem>>, vector<32x64xf32>
      tpu.vector_store %arg7[%c0_11, %c0_12], %12 {strides = array<i32>} : memref<32x64xf32, #tpu.memory_space<vmem>>, vector<32x64xf32>,
    } else {
    }
    %c0 = arith.constant 0 : index
    %c0_1 = arith.constant 0 : index
    %3 = vector.load %arg7[%c0, %c0_1] : memref<32x64xf32, #tpu.memory_space<vmem>>, vector<32x64xf32>
    %c0_2 = arith.constant 0 : index
    %c0_3 = arith.constant 0 : index
    %4 = vector.load %arg3[%c0_2, %c0_3] : memref<32x48xbf16, #tpu.memory_space<vmem>>, vector<32x48xbf16>
    %c0_4 = arith.constant 0 : index
    %c0_5 = arith.constant 0 : index
    %5 = vector.load %arg4[%c0_4, %c0_5] : memref<48x64xbf16, #tpu.memory_space<vmem>>, vector<48x64xbf16>
    %cst = arith.constant dense<0.000000e+00> : vector<32x64xf32>
    %6 = tpu.matmul %4, %5, %cst {dimension_numbers = #tpu.dot_dimension_numbers<[1], [0], [0], [1], [0, 0, 1, 1], [], []>} : vector<32x48xbf16>, vector<48x64xbf16>, vector<32x64xf32> -> vector<32x64xf32>
    %7 = arith.addf %3, %6 : vector<32x64xf32>
    %c0_6 = arith.constant 0 : index
    %c0_7 = arith.constant 0 : index
    %8 = vector.load %arg7[%c0_6, %c0_7] : memref<32x64xf32, #tpu.memory_space<vmem>>, vector<32x64xf32>
    tpu.vector_store %arg7[%c0_6, %c0_7], %7 {strides = array<i32>} : memref<32x64xf32, #tpu.memory_space<vmem>>, vector<32x64xf32>,
    %c0_i32_8 = arith.constant 0 : i32
    %9 = arith.cmpi eq, %arg2, %c0_i32_8 : i32
    %10 = arith.extui %9 : i1 to i32
    %c0_i32_9 = arith.constant 0 : i32
    %11 = arith.cmpi ne, %10, %c0_i32_9 : i32
    scf.if %11 {
      %c0_10 = arith.constant 0 : index
      %c0_11 = arith.constant 0 : index
      %12 = vector.load %arg7[%c0_10, %c0_11] : memref<32x64xf32, #tpu.memory_space<vmem>>, vector<32x64xf32>
      %c0_12 = arith.constant 0 : index
      %c0_13 = arith.constant 0 : index
      %13 = vector.load %arg5[%c0_12, %c0_13] : memref<1x64xf32, #tpu.memory_space<vmem>>, vector<1x64xf32>
      %14 = vector.broadcast %13 : vector<1x64xf32> to vector<32x64xf32>
      %15 = arith.addf %12, %14 : vector<32x64xf32>
      %c0_14 = arith.constant 0 : index
      %c0_15 = arith.constant 0 : index
      %16 = vector.load %arg6[%c0_14, %c0_15] : memref<32x64xf32, #tpu.memory_space<vmem>>, vector<32x64xf32>
      tpu.vector_store %arg6[%c0_14, %c0_15], %15 {strides = array<i32>} : memref<32x64xf32, #tpu.memory_space<vmem>>, vector<32x64xf32>,
    } else {
    }
    return
  }
  func.func @transform_0(%arg0: i32, %arg1: i32, %arg2: i32) -> (i32, i32) {
    %c0_i32 = arith.constant 0 : i32
    return %arg0, %arg2 : i32, i32
  }
  func.func @transform_1(%arg0: i32, %arg1: i32, %arg2: i32) -> (i32, i32) {
    %c0_i32 = arith.constant 0 : i32
    return %arg2, %arg1 : i32, i32
  }
  func.func @transform_2(%arg0: i32, %arg1: i32, %arg2: i32) -> (i32, i32) {
    %c0_i32 = arith.constant 0 : i32
    %c0_i32_0 = arith.constant 0 : i32
    return %c0_i32, %arg1 : i32, i32
  }
  func.func @transform_3(%arg0: i32, %arg1: i32, %arg2: i32) -> (i32, i32) {
    %c0_i32 = arith.constant 0 : i32
    return %arg0, %arg1 : i32, i32
  }
}

module attributes {stable_mosaic.version = 11 : i64} {
  func.func @_attn_block_kernel(%arg0: i32, %arg1: memref<1x16x64xf32, #tpu.memory_space<vmem>>, %arg2: memref<1x64xf32, #tpu.memory_space<vmem>>, %arg3: memref<1x64xf32, #tpu.memory_space<vmem>>, %arg4: memref<64x192xbf16, #tpu.memory_space<vmem>>, %arg5: memref<1x192xf32, #tpu.memory_space<vmem>>, %arg6: memref<64x64xbf16, #tpu.memory_space<vmem>>, %arg7: memref<1x64xf32, #tpu.memory_space<vmem>>, %arg8: memref<1x16x64xf32, #tpu.memory_space<vmem>>) attributes {dimension_semantics = [#tpu.dimension_semantics<parallel>], iteration_bounds = array<i64: 2>, scalar_prefetch = 0 : i64, scratch_operands = 0 : i64, tpu.core_type = #tpu.core_type<tc>, window_params = [{transform_indices = @transform_0, window_bounds = array<i64: 1, 16, 64>}, {pipeline_mode = #tpu.pipeline_mode<synchronous>, transform_indices = @transform_1, window_bounds = array<i64: 1, 64>}, {pipeline_mode = #tpu.pipeline_mode<synchronous>, transform_indices = @transform_2, window_bounds = array<i64: 1, 64>}, {pipeline_mode = #tpu.pipeline_mode<synchronous>, transform_indices = @transform_3, window_bounds = array<i64: 64, 192>}, {pipeline_mode = #tpu.pipeline_mode<synchronous>, transform_indices = @transform_4, window_bounds = array<i64: 1, 192>}, {pipeline_mode = #tpu.pipeline_mode<synchronous>, transform_indices = @transform_5, window_bounds = array<i64: 64, 64>}, {pipeline_mode = #tpu.pipeline_mode<synchronous>, transform_indices = @transform_6, window_bounds = array<i64: 1, 64>}, {transform_indices = @transform_7, window_bounds = array<i64: 1, 16, 64>}]} {
    %c0 = arith.constant 0 : index
    %c0_0 = arith.constant 0 : index
    %c0_1 = arith.constant 0 : index
    %0 = vector.load %arg1[%c0, %c0_0, %c0_1] : memref<1x16x64xf32, #tpu.memory_space<vmem>>, vector<1x16x64xf32>
    %1 = vector.shape_cast %0 : vector<1x16x64xf32> to vector<16x64xf32>
    %cst = arith.constant dense<0.000000e+00> : vector<16xf32>
    %2 = vector.multi_reduction <add>, %1, %cst [1] : vector<16x64xf32> to vector<16xf32>
    %3 = vector.shape_cast %2 : vector<16xf32> to vector<16x1xf32>
    %cst_2 = arith.constant 6.400000e+01 : f32
    %4 = vector.broadcast %cst_2 : f32 to vector<16x1xf32>
    %5 = arith.divf %3, %4 : vector<16x1xf32>
    %6 = vector.broadcast %5 : vector<16x1xf32> to vector<16x64xf32>
    %7 = arith.subf %1, %6 : vector<16x64xf32>
    %8 = arith.mulf %7, %7 : vector<16x64xf32>
    %cst_3 = arith.constant dense<0.000000e+00> : vector<16xf32>
    %9 = vector.multi_reduction <add>, %8, %cst_3 [1] : vector<16x64xf32> to vector<16xf32>
    %10 = vector.shape_cast %9 : vector<16xf32> to vector<16x1xf32>
    %cst_4 = arith.constant 6.400000e+01 : f32
    %11 = vector.broadcast %cst_4 : f32 to vector<16x1xf32>
    %12 = arith.divf %10, %11 : vector<16x1xf32>
    %13 = vector.broadcast %5 : vector<16x1xf32> to vector<16x64xf32>
    %14 = arith.subf %1, %13 : vector<16x64xf32>
    %cst_5 = arith.constant 9.99999974E-6 : f32
    %15 = vector.broadcast %cst_5 : f32 to vector<16x1xf32>
    %16 = arith.addf %12, %15 : vector<16x1xf32>
    %17 = math.rsqrt %16 : vector<16x1xf32>
    %18 = vector.broadcast %17 : vector<16x1xf32> to vector<16x64xf32>
    %19 = arith.mulf %14, %18 : vector<16x64xf32>
    %c0_6 = arith.constant 0 : index
    %c0_7 = arith.constant 0 : index
    %20 = vector.load %arg2[%c0_6, %c0_7] : memref<1x64xf32, #tpu.memory_space<vmem>>, vector<1x64xf32>
    %21 = vector.broadcast %20 : vector<1x64xf32> to vector<16x64xf32>
    %22 = arith.mulf %19, %21 : vector<16x64xf32>
    %c0_8 = arith.constant 0 : index
    %c0_9 = arith.constant 0 : index
    %23 = vector.load %arg3[%c0_8, %c0_9] : memref<1x64xf32, #tpu.memory_space<vmem>>, vector<1x64xf32>
    %24 = vector.broadcast %23 : vector<1x64xf32> to vector<16x64xf32>
    %25 = arith.addf %22, %24 : vector<16x64xf32>
    %26 = arith.truncf %25 : vector<16x64xf32> to vector<16x64xbf16>
    %c0_10 = arith.constant 0 : index
    %c0_11 = arith.constant 0 : index
    %27 = vector.load %arg4[%c0_10, %c0_11] : memref<64x192xbf16, #tpu.memory_space<vmem>>, vector<64x192xbf16>
    %cst_12 = arith.constant dense<0.000000e+00> : vector<16x192xf32>
    %28 = tpu.matmul %26, %27, %cst_12 {dimension_numbers = #tpu.dot_dimension_numbers<[1], [0], [0], [1], [0, 0, 1, 1], [], []>} : vector<16x64xbf16>, vector<64x192xbf16>, vector<16x192xf32> -> vector<16x192xf32>
    %c0_13 = arith.constant 0 : index
    %c0_14 = arith.constant 0 : index
    %29 = vector.load %arg5[%c0_13, %c0_14] : memref<1x192xf32, #tpu.memory_space<vmem>>, vector<1x192xf32>
    %30 = vector.broadcast %29 : vector<1x192xf32> to vector<16x192xf32>
    %31 = arith.addf %28, %30 : vector<16x192xf32>
    %32 = vector.extract_strided_slice %31 {offsets = [0, 0], sizes = [16, 64], strides = [1, 1]} : vector<16x192xf32> to vector<16x64xf32>
    %33 = vector.extract_strided_slice %31 {offsets = [0, 64], sizes = [16, 64], strides = [1, 1]} : vector<16x192xf32> to vector<16x64xf32>
    %34 = vector.extract_strided_slice %31 {offsets = [0, 128], sizes = [16, 64], strides = [1, 1]} : vector<16x192xf32> to vector<16x64xf32>
    %35 = vector.extract_strided_slice %32 {offsets = [0, 0], sizes = [16, 16], strides = [1, 1]} : vector<16x64xf32> to vector<16x16xf32>
    %36 = arith.truncf %35 : vector<16x16xf32> to vector<16x16xbf16>
    %37 = vector.extract_strided_slice %33 {offsets = [0, 0], sizes = [16, 16], strides = [1, 1]} : vector<16x64xf32> to vector<16x16xf32>
    %38 = arith.truncf %37 : vector<16x16xf32> to vector<16x16xbf16>
    %39 = vector.extract_strided_slice %34 {offsets = [0, 0], sizes = [16, 16], strides = [1, 1]} : vector<16x64xf32> to vector<16x16xf32>
    %40 = arith.truncf %39 : vector<16x16xf32> to vector<16x16xbf16>
    %cst_15 = arith.constant dense<0.000000e+00> : vector<16x16xf32>
    %41 = tpu.matmul %36, %38, %cst_15 {dimension_numbers = #tpu.dot_dimension_numbers<[1], [1], [0], [0], [0, 0, 1, 0], [], []>} : vector<16x16xbf16>, vector<16x16xbf16>, vector<16x16xf32> -> vector<16x16xf32>
    %cst_16 = arith.constant 2.500000e-01 : f32
    %42 = vector.broadcast %cst_16 : f32 to vector<16x16xf32>
    %43 = arith.mulf %41, %42 : vector<16x16xf32>
    %cst_17 = arith.constant dense<0xFF800000> : vector<16xf32>
    %44 = vector.multi_reduction <maximumf>, %43, %cst_17 [1] : vector<16x16xf32> to vector<16xf32>
    %45 = vector.shape_cast %44 : vector<16xf32> to vector<16x1xf32>
    %46 = vector.broadcast %45 : vector<16x1xf32> to vector<16x16xf32>
    %47 = arith.subf %43, %46 : vector<16x16xf32>
    %48 = math.exp %47 : vector<16x16xf32>
    %cst_18 = arith.constant dense<0.000000e+00> : vector<16xf32>
    %49 = vector.multi_reduction <add>, %48, %cst_18 [1] : vector<16x16xf32> to vector<16xf32>
    %50 = vector.shape_cast %49 : vector<16xf32> to vector<16x1xf32>
    %51 = tpu.reciprocal %50 {approx = true} : vector<16x1xf32> -> vector<16x1xf32>
    %52 = vector.broadcast %51 : vector<16x1xf32> to vector<16x16xf32>
    %53 = arith.mulf %48, %52 : vector<16x16xf32>
    %54 = arith.truncf %53 : vector<16x16xf32> to vector<16x16xbf16>
    %cst_19 = arith.constant dense<0.000000e+00> : vector<16x16xf32>
    %55 = tpu.matmul %54, %40, %cst_19 {dimension_numbers = #tpu.dot_dimension_numbers<[1], [0], [0], [1], [0, 0, 1, 1], [], []>} : vector<16x16xbf16>, vector<16x16xbf16>, vector<16x16xf32> -> vector<16x16xf32>
    %56 = vector.extract_strided_slice %32 {offsets = [0, 16], sizes = [16, 16], strides = [1, 1]} : vector<16x64xf32> to vector<16x16xf32>
    %57 = arith.truncf %56 : vector<16x16xf32> to vector<16x16xbf16>
    %58 = vector.extract_strided_slice %33 {offsets = [0, 16], sizes = [16, 16], strides = [1, 1]} : vector<16x64xf32> to vector<16x16xf32>
    %59 = arith.truncf %58 : vector<16x16xf32> to vector<16x16xbf16>
    %60 = vector.extract_strided_slice %34 {offsets = [0, 16], sizes = [16, 16], strides = [1, 1]} : vector<16x64xf32> to vector<16x16xf32>
    %61 = arith.truncf %60 : vector<16x16xf32> to vector<16x16xbf16>
    %cst_20 = arith.constant dense<0.000000e+00> : vector<16x16xf32>
    %62 = tpu.matmul %57, %59, %cst_20 {dimension_numbers = #tpu.dot_dimension_numbers<[1], [1], [0], [0], [0, 0, 1, 0], [], []>} : vector<16x16xbf16>, vector<16x16xbf16>, vector<16x16xf32> -> vector<16x16xf32>
    %cst_21 = arith.constant 2.500000e-01 : f32
    %63 = vector.broadcast %cst_21 : f32 to vector<16x16xf32>
    %64 = arith.mulf %62, %63 : vector<16x16xf32>
    %cst_22 = arith.constant dense<0xFF800000> : vector<16xf32>
    %65 = vector.multi_reduction <maximumf>, %64, %cst_22 [1] : vector<16x16xf32> to vector<16xf32>
    %66 = vector.shape_cast %65 : vector<16xf32> to vector<16x1xf32>
    %67 = vector.broadcast %66 : vector<16x1xf32> to vector<16x16xf32>
    %68 = arith.subf %64, %67 : vector<16x16xf32>
    %69 = math.exp %68 : vector<16x16xf32>
    %cst_23 = arith.constant dense<0.000000e+00> : vector<16xf32>
    %70 = vector.multi_reduction <add>, %69, %cst_23 [1] : vector<16x16xf32> to vector<16xf32>
    %71 = vector.shape_cast %70 : vector<16xf32> to vector<16x1xf32>
    %72 = tpu.reciprocal %71 {approx = true} : vector<16x1xf32> -> vector<16x1xf32>
    %73 = vector.broadcast %72 : vector<16x1xf32> to vector<16x16xf32>
    %74 = arith.mulf %69, %73 : vector<16x16xf32>
    %75 = arith.truncf %74 : vector<16x16xf32> to vector<16x16xbf16>
    %cst_24 = arith.constant dense<0.000000e+00> : vector<16x16xf32>
    %76 = tpu.matmul %75, %61, %cst_24 {dimension_numbers = #tpu.dot_dimension_numbers<[1], [0], [0], [1], [0, 0, 1, 1], [], []>} : vector<16x16xbf16>, vector<16x16xbf16>, vector<16x16xf32> -> vector<16x16xf32>
    %77 = vector.extract_strided_slice %32 {offsets = [0, 32], sizes = [16, 16], strides = [1, 1]} : vector<16x64xf32> to vector<16x16xf32>
    %78 = arith.truncf %77 : vector<16x16xf32> to vector<16x16xbf16>
    %79 = vector.extract_strided_slice %33 {offsets = [0, 32], sizes = [16, 16], strides = [1, 1]} : vector<16x64xf32> to vector<16x16xf32>
    %80 = arith.truncf %79 : vector<16x16xf32> to vector<16x16xbf16>
    %81 = vector.extract_strided_slice %34 {offsets = [0, 32], sizes = [16, 16], strides = [1, 1]} : vector<16x64xf32> to vector<16x16xf32>
    %82 = arith.truncf %81 : vector<16x16xf32> to vector<16x16xbf16>
    %cst_25 = arith.constant dense<0.000000e+00> : vector<16x16xf32>
    %83 = tpu.matmul %78, %80, %cst_25 {dimension_numbers = #tpu.dot_dimension_numbers<[1], [1], [0], [0], [0, 0, 1, 0], [], []>} : vector<16x16xbf16>, vector<16x16xbf16>, vector<16x16xf32> -> vector<16x16xf32>
    %cst_26 = arith.constant 2.500000e-01 : f32
    %84 = vector.broadcast %cst_26 : f32 to vector<16x16xf32>
    %85 = arith.mulf %83, %84 : vector<16x16xf32>
    %cst_27 = arith.constant dense<0xFF800000> : vector<16xf32>
    %86 = vector.multi_reduction <maximumf>, %85, %cst_27 [1] : vector<16x16xf32> to vector<16xf32>
    %87 = vector.shape_cast %86 : vector<16xf32> to vector<16x1xf32>
    %88 = vector.broadcast %87 : vector<16x1xf32> to vector<16x16xf32>
    %89 = arith.subf %85, %88 : vector<16x16xf32>
    %90 = math.exp %89 : vector<16x16xf32>
    %cst_28 = arith.constant dense<0.000000e+00> : vector<16xf32>
    %91 = vector.multi_reduction <add>, %90, %cst_28 [1] : vector<16x16xf32> to vector<16xf32>
    %92 = vector.shape_cast %91 : vector<16xf32> to vector<16x1xf32>
    %93 = tpu.reciprocal %92 {approx = true} : vector<16x1xf32> -> vector<16x1xf32>
    %94 = vector.broadcast %93 : vector<16x1xf32> to vector<16x16xf32>
    %95 = arith.mulf %90, %94 : vector<16x16xf32>
    %96 = arith.truncf %95 : vector<16x16xf32> to vector<16x16xbf16>
    %cst_29 = arith.constant dense<0.000000e+00> : vector<16x16xf32>
    %97 = tpu.matmul %96, %82, %cst_29 {dimension_numbers = #tpu.dot_dimension_numbers<[1], [0], [0], [1], [0, 0, 1, 1], [], []>} : vector<16x16xbf16>, vector<16x16xbf16>, vector<16x16xf32> -> vector<16x16xf32>
    %98 = vector.extract_strided_slice %32 {offsets = [0, 48], sizes = [16, 16], strides = [1, 1]} : vector<16x64xf32> to vector<16x16xf32>
    %99 = arith.truncf %98 : vector<16x16xf32> to vector<16x16xbf16>
    %100 = vector.extract_strided_slice %33 {offsets = [0, 48], sizes = [16, 16], strides = [1, 1]} : vector<16x64xf32> to vector<16x16xf32>
    %101 = arith.truncf %100 : vector<16x16xf32> to vector<16x16xbf16>
    %102 = vector.extract_strided_slice %34 {offsets = [0, 48], sizes = [16, 16], strides = [1, 1]} : vector<16x64xf32> to vector<16x16xf32>
    %103 = arith.truncf %102 : vector<16x16xf32> to vector<16x16xbf16>
    %cst_30 = arith.constant dense<0.000000e+00> : vector<16x16xf32>
    %104 = tpu.matmul %99, %101, %cst_30 {dimension_numbers = #tpu.dot_dimension_numbers<[1], [1], [0], [0], [0, 0, 1, 0], [], []>} : vector<16x16xbf16>, vector<16x16xbf16>, vector<16x16xf32> -> vector<16x16xf32>
    %cst_31 = arith.constant 2.500000e-01 : f32
    %105 = vector.broadcast %cst_31 : f32 to vector<16x16xf32>
    %106 = arith.mulf %104, %105 : vector<16x16xf32>
    %cst_32 = arith.constant dense<0xFF800000> : vector<16xf32>
    %107 = vector.multi_reduction <maximumf>, %106, %cst_32 [1] : vector<16x16xf32> to vector<16xf32>
    %108 = vector.shape_cast %107 : vector<16xf32> to vector<16x1xf32>
    %109 = vector.broadcast %108 : vector<16x1xf32> to vector<16x16xf32>
    %110 = arith.subf %106, %109 : vector<16x16xf32>
    %111 = math.exp %110 : vector<16x16xf32>
    %cst_33 = arith.constant dense<0.000000e+00> : vector<16xf32>
    %112 = vector.multi_reduction <add>, %111, %cst_33 [1] : vector<16x16xf32> to vector<16xf32>
    %113 = vector.shape_cast %112 : vector<16xf32> to vector<16x1xf32>
    %114 = tpu.reciprocal %113 {approx = true} : vector<16x1xf32> -> vector<16x1xf32>
    %115 = vector.broadcast %114 : vector<16x1xf32> to vector<16x16xf32>
    %116 = arith.mulf %111, %115 : vector<16x16xf32>
    %117 = arith.truncf %116 : vector<16x16xf32> to vector<16x16xbf16>
    %cst_34 = arith.constant dense<0.000000e+00> : vector<16x16xf32>
    %118 = tpu.matmul %117, %103, %cst_34 {dimension_numbers = #tpu.dot_dimension_numbers<[1], [0], [0], [1], [0, 0, 1, 1], [], []>} : vector<16x16xbf16>, vector<16x16xbf16>, vector<16x16xf32> -> vector<16x16xf32>
    %119 = tpu.concatenate %55, %76, %97, %118 in 1 : vector<16x16xf32>, vector<16x16xf32>, vector<16x16xf32>, vector<16x16xf32> -> vector<16x64xf32>
    %120 = arith.truncf %119 : vector<16x64xf32> to vector<16x64xbf16>
    %c0_35 = arith.constant 0 : index
    %c0_36 = arith.constant 0 : index
    %121 = vector.load %arg6[%c0_35, %c0_36] : memref<64x64xbf16, #tpu.memory_space<vmem>>, vector<64x64xbf16>
    %cst_37 = arith.constant dense<0.000000e+00> : vector<16x64xf32>
    %122 = tpu.matmul %120, %121, %cst_37 {dimension_numbers = #tpu.dot_dimension_numbers<[1], [0], [0], [1], [0, 0, 1, 1], [], []>} : vector<16x64xbf16>, vector<64x64xbf16>, vector<16x64xf32> -> vector<16x64xf32>
    %c0_38 = arith.constant 0 : index
    %c0_39 = arith.constant 0 : index
    %123 = vector.load %arg7[%c0_38, %c0_39] : memref<1x64xf32, #tpu.memory_space<vmem>>, vector<1x64xf32>
    %124 = vector.broadcast %123 : vector<1x64xf32> to vector<16x64xf32>
    %125 = arith.addf %122, %124 : vector<16x64xf32>
    %126 = arith.addf %1, %125 : vector<16x64xf32>
    %c0_40 = arith.constant 0 : index
    %c0_41 = arith.constant 0 : index
    %c0_42 = arith.constant 0 : index
    %127 = vector.load %arg8[%c0_40, %c0_41, %c0_42] : memref<1x16x64xf32, #tpu.memory_space<vmem>>, vector<1x16x64xf32>
    %128 = vector.shape_cast %127 : vector<1x16x64xf32> to vector<16x64xf32>
    %129 = vector.shape_cast %126 : vector<16x64xf32> to vector<1x16x64xf32>
    tpu.vector_store %arg8[%c0_40, %c0_41, %c0_42], %129 {strides = array<i32>} : memref<1x16x64xf32, #tpu.memory_space<vmem>>, vector<1x16x64xf32>,
    return
  }
  func.func @transform_0(%arg0: i32) -> (i32, i32, i32) {
    %c0_i32 = arith.constant 0 : i32
    %c0_i32_0 = arith.constant 0 : i32
    %c0_i32_1 = arith.constant 0 : i32
    return %arg0, %c0_i32, %c0_i32_0 : i32, i32, i32
  }
  func.func @transform_1(%arg0: i32) -> (i32, i32) {
    %c0_i32 = arith.constant 0 : i32
    %c0_i32_0 = arith.constant 0 : i32
    %c0_i32_1 = arith.constant 0 : i32
    return %c0_i32, %c0_i32_0 : i32, i32
  }
  func.func @transform_2(%arg0: i32) -> (i32, i32) {
    %c0_i32 = arith.constant 0 : i32
    %c0_i32_0 = arith.constant 0 : i32
    %c0_i32_1 = arith.constant 0 : i32
    return %c0_i32, %c0_i32_0 : i32, i32
  }
  func.func @transform_3(%arg0: i32) -> (i32, i32) {
    %c0_i32 = arith.constant 0 : i32
    %c0_i32_0 = arith.constant 0 : i32
    %c0_i32_1 = arith.constant 0 : i32
    return %c0_i32, %c0_i32_0 : i32, i32
  }
  func.func @transform_4(%arg0: i32) -> (i32, i32) {
    %c0_i32 = arith.constant 0 : i32
    %c0_i32_0 = arith.constant 0 : i32
    %c0_i32_1 = arith.constant 0 : i32
    return %c0_i32, %c0_i32_0 : i32, i32
  }
  func.func @transform_5(%arg0: i32) -> (i32, i32) {
    %c0_i32 = arith.constant 0 : i32
    %c0_i32_0 = arith.constant 0 : i32
    %c0_i32_1 = arith.constant 0 : i32
    return %c0_i32, %c0_i32_0 : i32, i32
  }
  func.func @transform_6(%arg0: i32) -> (i32, i32) {
    %c0_i32 = arith.constant 0 : i32
    %c0_i32_0 = arith.constant 0 : i32
    %c0_i32_1 = arith.constant 0 : i32
    return %c0_i32, %c0_i32_0 : i32, i32
  }
  func.func @transform_7(%arg0: i32) -> (i32, i32, i32) {
    %c0_i32 = arith.constant 0 : i32
    %c0_i32_0 = arith.constant 0 : i32
    %c0_i32_1 = arith.constant 0 : i32
    return %arg0, %c0_i32, %c0_i32_0 : i32, i32, i32
  }
}

module attributes {stable_mosaic.version = 11 : i64} {
  func.func @_moe_kernel(%arg0: i32, %arg1: i32, %arg2: memref<32x64xf32, #tpu.memory_space<vmem>>, %arg3: memref<32x64xbf16, #tpu.memory_space<vmem>>, %arg4: memref<1x64x256xbf16, #tpu.memory_space<vmem>>, %arg5: memref<1x1x256xf32, #tpu.memory_space<vmem>>, %arg6: memref<1x256x64xbf16, #tpu.memory_space<vmem>>, %arg7: memref<1x1x64xf32, #tpu.memory_space<vmem>>, %arg8: memref<1x32x1xf32, #tpu.memory_space<vmem>>, %arg9: memref<32x64xf32, #tpu.memory_space<vmem>>, %arg10: memref<32x64xf32, #tpu.memory_space<vmem>>) attributes {dimension_semantics = [#tpu.dimension_semantics<parallel>, #tpu.dimension_semantics<arbitrary>], iteration_bounds = array<i64: 1, 6>, scalar_prefetch = 0 : i64, scratch_operands = 1 : i64, tpu.core_type = #tpu.core_type<tc>, window_params = [{transform_indices = @transform_0, window_bounds = array<i64: 32, 64>}, {transform_indices = @transform_1, window_bounds = array<i64: 32, 64>}, {transform_indices = @transform_2, window_bounds = array<i64: 1, 64, 256>}, {transform_indices = @transform_3, window_bounds = array<i64: 1, 1, 256>}, {transform_indices = @transform_4, window_bounds = array<i64: 1, 256, 64>}, {transform_indices = @transform_5, window_bounds = array<i64: 1, 1, 64>}, {transform_indices = @transform_6, window_bounds = array<i64: 1, 32, 1>}, {transform_indices = @transform_7, window_bounds = array<i64: 32, 64>}]} {
    %c0_i32 = arith.constant 0 : i32
    %0 = arith.cmpi eq, %arg1, %c0_i32 : i32
    %1 = arith.extui %0 : i1 to i32
    %c0_i32_0 = arith.constant 0 : i32
    %2 = arith.cmpi ne, %1, %c0_i32_0 : i32
    scf.if %2 {
      %cst_27 = arith.constant 0.000000e+00 : f32
      %42 = vector.broadcast %cst_27 : f32 to vector<32x64xf32>
      %c0_28 = arith.constant 0 : index
      %c0_29 = arith.constant 0 : index
      %43 = vector.load %arg10[%c0_28, %c0_29] : memref<32x64xf32, #tpu.memory_space<vmem>>, vector<32x64xf32>
      tpu.vector_store %arg10[%c0_28, %c0_29], %42 {strides = array<i32>} : memref<32x64xf32, #tpu.memory_space<vmem>>, vector<32x64xf32>,
    } else {
    }
    %c0 = arith.constant 0 : index
    %c0_1 = arith.constant 0 : index
    %3 = vector.load %arg3[%c0, %c0_1] : memref<32x64xbf16, #tpu.memory_space<vmem>>, vector<32x64xbf16>
    %c0_2 = arith.constant 0 : index
    %c0_3 = arith.constant 0 : index
    %c0_4 = arith.constant 0 : index
    %4 = vector.load %arg4[%c0_2, %c0_3, %c0_4] : memref<1x64x256xbf16, #tpu.memory_space<vmem>>, vector<1x64x256xbf16>
    %5 = vector.shape_cast %4 : vector<1x64x256xbf16> to vector<64x256xbf16>
    %cst = arith.constant dense<0.000000e+00> : vector<32x256xf32>
    %6 = tpu.matmul %3, %5, %cst {dimension_numbers = #tpu.dot_dimension_numbers<[1], [0], [0], [1], [0, 0, 1, 1], [], []>} : vector<32x64xbf16>, vector<64x256xbf16>, vector<32x256xf32> -> vector<32x256xf32>
    %c0_5 = arith.constant 0 : index
    %c0_6 = arith.constant 0 : index
    %c0_7 = arith.constant 0 : index
    %7 = vector.load %arg5[%c0_5, %c0_6, %c0_7] : memref<1x1x256xf32, #tpu.memory_space<vmem>>, vector<1x1x256xf32>
    %8 = vector.shape_cast %7 : vector<1x1x256xf32> to vector<1x256xf32>
    %9 = vector.broadcast %8 : vector<1x256xf32> to vector<32x256xf32>
    %10 = arith.addf %6, %9 : vector<32x256xf32>
    %11 = arith.mulf %10, %10 : vector<32x256xf32>
    %12 = arith.mulf %10, %11 : vector<32x256xf32>
    %cst_8 = arith.constant 4.471500e-02 : f32
    %13 = vector.broadcast %cst_8 : f32 to vector<32x256xf32>
    %14 = arith.mulf %13, %12 : vector<32x256xf32>
    %15 = arith.addf %10, %14 : vector<32x256xf32>
    %cst_9 = arith.constant 0.797884583 : f32
    %16 = vector.broadcast %cst_9 : f32 to vector<32x256xf32>
    %17 = arith.mulf %16, %15 : vector<32x256xf32>
    %18 = math.tanh %17 : vector<32x256xf32>
    %cst_10 = arith.constant 1.000000e+00 : f32
    %19 = vector.broadcast %cst_10 : f32 to vector<32x256xf32>
    %20 = arith.addf %19, %18 : vector<32x256xf32>
    %cst_11 = arith.constant 5.000000e-01 : f32
    %21 = vector.broadcast %cst_11 : f32 to vector<32x256xf32>
    %22 = arith.mulf %21, %20 : vector<32x256xf32>
    %23 = arith.mulf %10, %22 : vector<32x256xf32>
    %24 = arith.truncf %23 : vector<32x256xf32> to vector<32x256xbf16>
    %c0_12 = arith.constant 0 : index
    %c0_13 = arith.constant 0 : index
    %c0_14 = arith.constant 0 : index
    %25 = vector.load %arg6[%c0_12, %c0_13, %c0_14] : memref<1x256x64xbf16, #tpu.memory_space<vmem>>, vector<1x256x64xbf16>
    %26 = vector.shape_cast %25 : vector<1x256x64xbf16> to vector<256x64xbf16>
    %cst_15 = arith.constant dense<0.000000e+00> : vector<32x64xf32>
    %27 = tpu.matmul %24, %26, %cst_15 {dimension_numbers = #tpu.dot_dimension_numbers<[1], [0], [0], [1], [0, 0, 1, 1], [], []>} : vector<32x256xbf16>, vector<256x64xbf16>, vector<32x64xf32> -> vector<32x64xf32>
    %c0_16 = arith.constant 0 : index
    %c0_17 = arith.constant 0 : index
    %c0_18 = arith.constant 0 : index
    %28 = vector.load %arg7[%c0_16, %c0_17, %c0_18] : memref<1x1x64xf32, #tpu.memory_space<vmem>>, vector<1x1x64xf32>
    %29 = vector.shape_cast %28 : vector<1x1x64xf32> to vector<1x64xf32>
    %30 = vector.broadcast %29 : vector<1x64xf32> to vector<32x64xf32>
    %31 = arith.addf %27, %30 : vector<32x64xf32>
    %c0_19 = arith.constant 0 : index
    %c0_20 = arith.constant 0 : index
    %32 = vector.load %arg10[%c0_19, %c0_20] : memref<32x64xf32, #tpu.memory_space<vmem>>, vector<32x64xf32>
    %c0_21 = arith.constant 0 : index
    %c0_22 = arith.constant 0 : index
    %c0_23 = arith.constant 0 : index
    %33 = vector.load %arg8[%c0_21, %c0_22, %c0_23] : memref<1x32x1xf32, #tpu.memory_space<vmem>>, vector<1x32x1xf32>
    %34 = vector.shape_cast %33 : vector<1x32x1xf32> to vector<32x1xf32>
    %35 = vector.broadcast %34 : vector<32x1xf32> to vector<32x64xf32>
    %36 = arith.mulf %31, %35 : vector<32x64xf32>
    %37 = arith.addf %32, %36 : vector<32x64xf32>
    %c0_24 = arith.constant 0 : index
    %c0_25 = arith.constant 0 : index
    %38 = vector.load %arg10[%c0_24, %c0_25] : memref<32x64xf32, #tpu.memory_space<vmem>>, vector<32x64xf32>
    tpu.vector_store %arg10[%c0_24, %c0_25], %37 {strides = array<i32>} : memref<32x64xf32, #tpu.memory_space<vmem>>, vector<32x64xf32>,
    %c5_i32 = arith.constant 5 : i32
    %39 = arith.cmpi eq, %arg1, %c5_i32 : i32
    %40 = arith.extui %39 : i1 to i32
    %c0_i32_26 = arith.constant 0 : i32
    %41 = arith.cmpi ne, %40, %c0_i32_26 : i32
    scf.if %41 {
      %c0_27 = arith.constant 0 : index
      %c0_28 = arith.constant 0 : index
      %42 = vector.load %arg2[%c0_27, %c0_28] : memref<32x64xf32, #tpu.memory_space<vmem>>, vector<32x64xf32>
      %c0_29 = arith.constant 0 : index
      %c0_30 = arith.constant 0 : index
      %43 = vector.load %arg10[%c0_29, %c0_30] : memref<32x64xf32, #tpu.memory_space<vmem>>, vector<32x64xf32>
      %44 = arith.addf %42, %43 : vector<32x64xf32>
      %c0_31 = arith.constant 0 : index
      %c0_32 = arith.constant 0 : index
      %45 = vector.load %arg9[%c0_31, %c0_32] : memref<32x64xf32, #tpu.memory_space<vmem>>, vector<32x64xf32>
      tpu.vector_store %arg9[%c0_31, %c0_32], %44 {strides = array<i32>} : memref<32x64xf32, #tpu.memory_space<vmem>>, vector<32x64xf32>,
    } else {
    }
    return
  }
  func.func @transform_0(%arg0: i32, %arg1: i32) -> (i32, i32) {
    %c0_i32 = arith.constant 0 : i32
    %c0_i32_0 = arith.constant 0 : i32
    return %arg0, %c0_i32 : i32, i32
  }
  func.func @transform_1(%arg0: i32, %arg1: i32) -> (i32, i32) {
    %c0_i32 = arith.constant 0 : i32
    %c0_i32_0 = arith.constant 0 : i32
    return %arg0, %c0_i32 : i32, i32
  }
  func.func @transform_2(%arg0: i32, %arg1: i32) -> (i32, i32, i32) {
    %c0_i32 = arith.constant 0 : i32
    %c0_i32_0 = arith.constant 0 : i32
    %c0_i32_1 = arith.constant 0 : i32
    return %arg1, %c0_i32, %c0_i32_0 : i32, i32, i32
  }
  func.func @transform_3(%arg0: i32, %arg1: i32) -> (i32, i32, i32) {
    %c0_i32 = arith.constant 0 : i32
    %c0_i32_0 = arith.constant 0 : i32
    %c0_i32_1 = arith.constant 0 : i32
    return %arg1, %c0_i32, %c0_i32_0 : i32, i32, i32
  }
  func.func @transform_4(%arg0: i32, %arg1: i32) -> (i32, i32, i32) {
    %c0_i32 = arith.constant 0 : i32
    %c0_i32_0 = arith.constant 0 : i32
    %c0_i32_1 = arith.constant 0 : i32
    return %arg1, %c0_i32, %c0_i32_0 : i32, i32, i32
  }
  func.func @transform_5(%arg0: i32, %arg1: i32) -> (i32, i32, i32) {
    %c0_i32 = arith.constant 0 : i32
    %c0_i32_0 = arith.constant 0 : i32
    %c0_i32_1 = arith.constant 0 : i32
    return %arg1, %c0_i32, %c0_i32_0 : i32, i32, i32
  }
  func.func @transform_6(%arg0: i32, %arg1: i32) -> (i32, i32, i32) {
    %c0_i32 = arith.constant 0 : i32
    %c0_i32_0 = arith.constant 0 : i32
    return %arg1, %arg0, %c0_i32 : i32, i32, i32
  }
  func.func @transform_7(%arg0: i32, %arg1: i32) -> (i32, i32) {
    %c0_i32 = arith.constant 0 : i32
    %c0_i32_0 = arith.constant 0 : i32
    return %arg0, %c0_i32 : i32, i32
  }
}

module attributes {stable_mosaic.version = 11 : i64} {
  func.func @_ffn_kernel(%arg0: i32, %arg1: memref<32x64xf32, #tpu.memory_space<vmem>>, %arg2: memref<1x64xf32, #tpu.memory_space<vmem>>, %arg3: memref<1x64xf32, #tpu.memory_space<vmem>>, %arg4: memref<64x256xbf16, #tpu.memory_space<vmem>>, %arg5: memref<1x256xf32, #tpu.memory_space<vmem>>, %arg6: memref<256x64xbf16, #tpu.memory_space<vmem>>, %arg7: memref<1x64xf32, #tpu.memory_space<vmem>>, %arg8: memref<32x64xf32, #tpu.memory_space<vmem>>) attributes {dimension_semantics = [#tpu.dimension_semantics<parallel>], iteration_bounds = array<i64: 1>, scalar_prefetch = 0 : i64, scratch_operands = 0 : i64, tpu.core_type = #tpu.core_type<tc>, window_params = [{transform_indices = @transform_0, window_bounds = array<i64: 32, 64>}, {pipeline_mode = #tpu.pipeline_mode<synchronous>, transform_indices = @transform_1, window_bounds = array<i64: 1, 64>}, {pipeline_mode = #tpu.pipeline_mode<synchronous>, transform_indices = @transform_2, window_bounds = array<i64: 1, 64>}, {pipeline_mode = #tpu.pipeline_mode<synchronous>, transform_indices = @transform_3, window_bounds = array<i64: 64, 256>}, {pipeline_mode = #tpu.pipeline_mode<synchronous>, transform_indices = @transform_4, window_bounds = array<i64: 1, 256>}, {pipeline_mode = #tpu.pipeline_mode<synchronous>, transform_indices = @transform_5, window_bounds = array<i64: 256, 64>}, {pipeline_mode = #tpu.pipeline_mode<synchronous>, transform_indices = @transform_6, window_bounds = array<i64: 1, 64>}, {transform_indices = @transform_7, window_bounds = array<i64: 32, 64>}]} {
    %c0 = arith.constant 0 : index
    %c0_0 = arith.constant 0 : index
    %0 = vector.load %arg1[%c0, %c0_0] : memref<32x64xf32, #tpu.memory_space<vmem>>, vector<32x64xf32>
    %cst = arith.constant dense<0.000000e+00> : vector<32xf32>
    %1 = vector.multi_reduction <add>, %0, %cst [1] : vector<32x64xf32> to vector<32xf32>
    %2 = vector.shape_cast %1 : vector<32xf32> to vector<32x1xf32>
    %cst_1 = arith.constant 6.400000e+01 : f32
    %3 = vector.broadcast %cst_1 : f32 to vector<32x1xf32>
    %4 = arith.divf %2, %3 : vector<32x1xf32>
    %5 = vector.broadcast %4 : vector<32x1xf32> to vector<32x64xf32>
    %6 = arith.subf %0, %5 : vector<32x64xf32>
    %7 = arith.mulf %6, %6 : vector<32x64xf32>
    %cst_2 = arith.constant dense<0.000000e+00> : vector<32xf32>
    %8 = vector.multi_reduction <add>, %7, %cst_2 [1] : vector<32x64xf32> to vector<32xf32>
    %9 = vector.shape_cast %8 : vector<32xf32> to vector<32x1xf32>
    %cst_3 = arith.constant 6.400000e+01 : f32
    %10 = vector.broadcast %cst_3 : f32 to vector<32x1xf32>
    %11 = arith.divf %9, %10 : vector<32x1xf32>
    %12 = vector.broadcast %4 : vector<32x1xf32> to vector<32x64xf32>
    %13 = arith.subf %0, %12 : vector<32x64xf32>
    %cst_4 = arith.constant 9.99999974E-6 : f32
    %14 = vector.broadcast %cst_4 : f32 to vector<32x1xf32>
    %15 = arith.addf %11, %14 : vector<32x1xf32>
    %16 = math.rsqrt %15 : vector<32x1xf32>
    %17 = vector.broadcast %16 : vector<32x1xf32> to vector<32x64xf32>
    %18 = arith.mulf %13, %17 : vector<32x64xf32>
    %c0_5 = arith.constant 0 : index
    %c0_6 = arith.constant 0 : index
    %19 = vector.load %arg2[%c0_5, %c0_6] : memref<1x64xf32, #tpu.memory_space<vmem>>, vector<1x64xf32>
    %20 = vector.broadcast %19 : vector<1x64xf32> to vector<32x64xf32>
    %21 = arith.mulf %18, %20 : vector<32x64xf32>
    %c0_7 = arith.constant 0 : index
    %c0_8 = arith.constant 0 : index
    %22 = vector.load %arg3[%c0_7, %c0_8] : memref<1x64xf32, #tpu.memory_space<vmem>>, vector<1x64xf32>
    %23 = vector.broadcast %22 : vector<1x64xf32> to vector<32x64xf32>
    %24 = arith.addf %21, %23 : vector<32x64xf32>
    %25 = arith.truncf %24 : vector<32x64xf32> to vector<32x64xbf16>
    %c0_9 = arith.constant 0 : index
    %c0_10 = arith.constant 0 : index
    %26 = vector.load %arg4[%c0_9, %c0_10] : memref<64x256xbf16, #tpu.memory_space<vmem>>, vector<64x256xbf16>
    %cst_11 = arith.constant dense<0.000000e+00> : vector<32x256xf32>
    %27 = tpu.matmul %25, %26, %cst_11 {dimension_numbers = #tpu.dot_dimension_numbers<[1], [0], [0], [1], [0, 0, 1, 1], [], []>} : vector<32x64xbf16>, vector<64x256xbf16>, vector<32x256xf32> -> vector<32x256xf32>
    %c0_12 = arith.constant 0 : index
    %c0_13 = arith.constant 0 : index
    %28 = vector.load %arg5[%c0_12, %c0_13] : memref<1x256xf32, #tpu.memory_space<vmem>>, vector<1x256xf32>
    %29 = vector.broadcast %28 : vector<1x256xf32> to vector<32x256xf32>
    %30 = arith.addf %27, %29 : vector<32x256xf32>
    %31 = arith.mulf %30, %30 : vector<32x256xf32>
    %32 = arith.mulf %30, %31 : vector<32x256xf32>
    %cst_14 = arith.constant 4.471500e-02 : f32
    %33 = vector.broadcast %cst_14 : f32 to vector<32x256xf32>
    %34 = arith.mulf %33, %32 : vector<32x256xf32>
    %35 = arith.addf %30, %34 : vector<32x256xf32>
    %cst_15 = arith.constant 0.797884583 : f32
    %36 = vector.broadcast %cst_15 : f32 to vector<32x256xf32>
    %37 = arith.mulf %36, %35 : vector<32x256xf32>
    %38 = math.tanh %37 : vector<32x256xf32>
    %cst_16 = arith.constant 1.000000e+00 : f32
    %39 = vector.broadcast %cst_16 : f32 to vector<32x256xf32>
    %40 = arith.addf %39, %38 : vector<32x256xf32>
    %cst_17 = arith.constant 5.000000e-01 : f32
    %41 = vector.broadcast %cst_17 : f32 to vector<32x256xf32>
    %42 = arith.mulf %41, %40 : vector<32x256xf32>
    %43 = arith.mulf %30, %42 : vector<32x256xf32>
    %44 = arith.truncf %43 : vector<32x256xf32> to vector<32x256xbf16>
    %c0_18 = arith.constant 0 : index
    %c0_19 = arith.constant 0 : index
    %45 = vector.load %arg6[%c0_18, %c0_19] : memref<256x64xbf16, #tpu.memory_space<vmem>>, vector<256x64xbf16>
    %cst_20 = arith.constant dense<0.000000e+00> : vector<32x64xf32>
    %46 = tpu.matmul %44, %45, %cst_20 {dimension_numbers = #tpu.dot_dimension_numbers<[1], [0], [0], [1], [0, 0, 1, 1], [], []>} : vector<32x256xbf16>, vector<256x64xbf16>, vector<32x64xf32> -> vector<32x64xf32>
    %c0_21 = arith.constant 0 : index
    %c0_22 = arith.constant 0 : index
    %47 = vector.load %arg7[%c0_21, %c0_22] : memref<1x64xf32, #tpu.memory_space<vmem>>, vector<1x64xf32>
    %48 = vector.broadcast %47 : vector<1x64xf32> to vector<32x64xf32>
    %49 = arith.addf %46, %48 : vector<32x64xf32>
    %50 = arith.addf %0, %49 : vector<32x64xf32>
    %c0_23 = arith.constant 0 : index
    %c0_24 = arith.constant 0 : index
    %51 = vector.load %arg8[%c0_23, %c0_24] : memref<32x64xf32, #tpu.memory_space<vmem>>, vector<32x64xf32>
    tpu.vector_store %arg8[%c0_23, %c0_24], %50 {strides = array<i32>} : memref<32x64xf32, #tpu.memory_space<vmem>>, vector<32x64xf32>,
    return
  }
  func.func @transform_0(%arg0: i32) -> (i32, i32) {
    %c0_i32 = arith.constant 0 : i32
    %c0_i32_0 = arith.constant 0 : i32
    return %arg0, %c0_i32 : i32, i32
  }
  func.func @transform_1(%arg0: i32) -> (i32, i32) {
    %c0_i32 = arith.constant 0 : i32
    %c0_i32_0 = arith.constant 0 : i32
    %c0_i32_1 = arith.constant 0 : i32
    return %c0_i32, %c0_i32_0 : i32, i32
  }
  func.func @transform_2(%arg0: i32) -> (i32, i32) {
    %c0_i32 = arith.constant 0 : i32
    %c0_i32_0 = arith.constant 0 : i32
    %c0_i32_1 = arith.constant 0 : i32
    return %c0_i32, %c0_i32_0 : i32, i32
  }
  func.func @transform_3(%arg0: i32) -> (i32, i32) {
    %c0_i32 = arith.constant 0 : i32
    %c0_i32_0 = arith.constant 0 : i32
    %c0_i32_1 = arith.constant 0 : i32
    return %c0_i32, %c0_i32_0 : i32, i32
  }
  func.func @transform_4(%arg0: i32) -> (i32, i32) {
    %c0_i32 = arith.constant 0 : i32
    %c0_i32_0 = arith.constant 0 : i32
    %c0_i32_1 = arith.constant 0 : i32
    return %c0_i32, %c0_i32_0 : i32, i32
  }
  func.func @transform_5(%arg0: i32) -> (i32, i32) {
    %c0_i32 = arith.constant 0 : i32
    %c0_i32_0 = arith.constant 0 : i32
    %c0_i32_1 = arith.constant 0 : i32
    return %c0_i32, %c0_i32_0 : i32, i32
  }
  func.func @transform_6(%arg0: i32) -> (i32, i32) {
    %c0_i32 = arith.constant 0 : i32
    %c0_i32_0 = arith.constant 0 : i32
    %c0_i32_1 = arith.constant 0 : i32
    return %c0_i32, %c0_i32_0 : i32, i32
  }
  func.func @transform_7(%arg0: i32) -> (i32, i32) {
    %c0_i32 = arith.constant 0 : i32
    %c0_i32_0 = arith.constant 0 : i32
    return %arg0, %c0_i32 : i32, i32
  }
}

</mosaic_0001>

<bundles_post_ra>
// kernel: multimodal_moe_forward.7
= control target key start
LH: loop header
LB: loop body
LE: loop exit
PB: predicated region body
PF: predicated region fallthrough
CT: control target
= control target key end

     0   :  { %vm19_vm0 = vcmask 523264   ;;  %v186_v1 = vmov 0.0   ;;  %vm66_vm1 = vcmask 392192   ;;  %s249_s1 = inlined_call_operand.vmem [shape: bf16[48,64], index: 1, kind: input, shape index: {}]   ;;  %s250_s0 = inlined_call_operand.vmem [shape: bf16[32,48], index: 0, kind: input, shape index: {}]   ;;  %s251_s2 = inlined_call_operand.vmem [shape: f32[1,64], index: 2, kind: input, shape index: {}]   ;;  %s252_s3 = inlined_call_operand.vmem [shape: f32[32,64], index: 3, kind: output, shape index: {}]  }
   0x1   :  { %v181_v0 = vld [vmem:[%s249_s1 + $0x10] sm:$0xff]   ;;  %22 = vst.msk [vmem:[#allocation2 + $0x10] sm:$0xff] %vm19_vm0, %v186_v1  ;;  %20 = vst.msk [vmem:[#allocation2] sm:$0xff] %vm19_vm0, %v186_v1  ;;  %v182_v2 = vld [vmem:[%s249_s1 + $0x8] sm:$0xff]  }
   0x2   :  { %21 = vst.msk [vmem:[#allocation2 + $0x8] sm:$0xff] %vm19_vm0, %v186_v1  ;;  %23 = vst.msk [vmem:[#allocation2 + $0x18] sm:$0xff] %vm19_vm0, %v186_v1  ;;  %170 = vmatprep.subr.bf16.mxu0 %v181_v0  ;;  %v184_v3 = vld [vmem:[%s250_s0] sm:$0xff]   ;;  %v185_v5 = vld [vmem:[%s250_s0 + $0x8] sm:$0xff]  }
   0x3   :  { %171 = vmatpush3.bf16.msra.mxu0 %v181_v0  ;;  %v183_v4 = vld [vmem:[%s249_s1] sm:$0xff]   ;;  %176 = vmatprep.mubr.msk.bf16.mxu0 %vm66_vm1, %v184_v3 }
   0x4   :  { %172 = vmatprep.subr.bf16.mxu0 %v182_v2  ;;  %v164_v18 = vld [vmem:[%s251_s2] ss:$0 sm:$0xff] }
   0x7   :  { %173 = vmatpush3.bf16.msra.mxu0 %v182_v2 }
   0x8   :  { %174 = vmatprep.subr.bf16.mxu0 %v183_v4  ;;  %v26_v6 = vld [vmem:[#allocation2 + $0x10] sm:$0xff]  ;;  %v24_v8 = vld [vmem:[#allocation2] sm:$0xff] }
   0x9   :  { %v27_v11 = vld [vmem:[#allocation2 + $0x18] sm:$0xff]  ;;  %v25_v14 = vld [vmem:[#allocation2 + $0x8] sm:$0xff] }
   0xb   :  { %175 = vmatpush3.bf16.msra.mxu0 %v183_v4 }
   0xe   :  { %177 = vmatmul.mubr.msk.bf16.vlgmr.msra.gmra.mxu0 %vm66_vm1, %v185_v5 }
  0xce   :  { %v178_v7 = vpop.f32.mrf.mxu0 }
  0xcf   :  { %v124_v9 = vadd.f32 %v178_v7, %v26_v6 }
  0xd0   :  { %v107_v10 = vpop.f32.mrf.mxu0 }
  0xd1   :  { %129 = vst.msk [vmem:[#allocation2 + $0x10] sm:$0xff] %vm19_vm0, %v124_v9  ;;  %v122_v12 = vadd.f32 %v107_v10, %v24_v8 }
  0xd2   :  { %v179_v13 = vpop.f32.mrf.mxu0 }
  0xd3   :  { %127 = vst.msk [vmem:[#allocation2] sm:$0xff] %vm19_vm0, %v122_v12  ;;  %v125_v15 = vadd.f32 %v179_v13, %v27_v11 }
  0xd4   :  { %v110_v16 = vpop.f32.mrf.mxu0 }
  0xd5   :  { %130 = vst.msk [vmem:[#allocation2 + $0x18] sm:$0xff] %vm19_vm0, %v125_v15  ;;  %v123_v17 = vadd.f32 %v110_v16, %v25_v14 }
  0xd7   :  { %128 = vst.msk [vmem:[#allocation2 + $0x8] sm:$0xff] %vm19_vm0, %v123_v17 }
  0xd8   :  { %v136_v19 = vld [vmem:[#allocation2 + $0x10] sm:$0xff] }
  0xd9   :  { %v147_v20 = vadd.f32 %v164_v18, %v136_v19 }
  0xda   :  { %v134_v21 = vld [vmem:[#allocation2] sm:$0xff] }
  0xdb   :  { %151 = vst.msk [vmem:[%s252_s3 + $0x10] sm:$0xff] %vm19_vm0, %v147_v20  ;;  %v145_v22 = vadd.f32 %v164_v18, %v134_v21 }
  0xdc   :  { %v137_v23 = vld [vmem:[#allocation2 + $0x18] sm:$0xff] }
  0xdd   :  { %149 = vst.msk [vmem:[%s252_s3] sm:$0xff] %vm19_vm0, %v145_v22  ;;  %v148_v24 = vadd.f32 %v164_v18, %v137_v23 }
  0xde   :  { %v135_v25 = vld [vmem:[#allocation2 + $0x8] sm:$0xff] }
  0xdf   :  { %152 = vst.msk [vmem:[%s252_s3 + $0x18] sm:$0xff] %vm19_vm0, %v148_v24  ;;  %v146_v26 = vadd.f32 %v164_v18, %v135_v25 }
  0xe1   :  { %150 = vst.msk [vmem:[%s252_s3 + $0x8] sm:$0xff] %vm19_vm0, %v146_v26 }

// kernel: multimodal_moe_forward.8
= control target key start
LH: loop header
LB: loop body
LE: loop exit
PB: predicated region body
PF: predicated region fallthrough
CT: control target
= control target key end

     0   :  { %s1364_s24 = smov 0   ;;  %s1554_s0 = inlined_call_operand.vmem [shape: f32[2,16,64], index: 0, kind: input, shape index: {}]   ;;  %s1555_s1 = inlined_call_operand.vmem [shape: f32[1,64], index: 1, kind: input, shape index: {}]   ;;  %s1556_s2 = inlined_call_operand.vmem [shape: f32[1,64], index: 2, kind: input, shape index: {}]   ;;  %s1557_s3 = inlined_call_operand.vmem [shape: bf16[64,192], index: 3, kind: input, shape index: {}]   ;;  %s1558_s4 = inlined_call_operand.vmem [shape: f32[1,192], index: 4, kind: input, shape index: {}]   ;;  %s1559_s5 = inlined_call_operand.vmem [shape: bf16[64,64], index: 5, kind: input, shape index: {}]   ;;  %s1560_s6 = inlined_call_operand.vmem [shape: f32[1,64], index: 6, kind: input, shape index: {}]   ;;  %s1561_s7 = inlined_call_operand.vmem [shape: f32[2,16,64], index: 7, kind: output, shape index: {}]  }
   0x1 LB: > { %s1102_s25 = sadd.s32 4294967295, %s1312_s24   ;;  %p1106_p0 = scmp.ge.s32.totalorder %s1312_s24, 1  ;;  %s1312_s24 = sphi %s1364_s24, %s17_s24  }
   0x2   : > { %p237_p1 = scmp.lt.s32.totalorder %s1312_s24, 3 }
   0x4   : > { %p238_p2 = pnand %p1106_p0, %p237_p1 }
   0x5   : > { %p269_p3 = scmp.lt.s32.totalorder (!%p238_p2), %s1102_s25, 1  ;;  %s1317_s9 = smov (!%p238_p2), 64  }
   0x6   : > { %241 = sbr.rel (%p238_p2) target bundleno = 2237 (0x8bd), region = 48  ;;  %s1318_s10 = smov (!%p238_p2), 112  }
   0x7   : > { %s1319_s11 = smov (!%p238_p2), 32   ;;  %s1320_s12 = smov (!%p238_p2), 96  }
   0x8   : > { %s1321_s13 = smov (!%p238_p2), 80   ;;  %s1322_s14 = smov (!%p238_p2), 48  }
   0x9   : > { %s1323_s15 = smov (!%p238_p2), 16  }
   0xb   : > { %s1563_s25 = smov (!%p269_p3, %s1102_s25), 1  ;;  %vm282_vm0 = vcmask 523264   ;;  %v1254_v14 = vld [vmem:[%s1557_s3 + $0x34] ss:$8 sps:$4 sm:$0xff]   ;;  %v1256_v15 = vld [vmem:[%s1557_s3 + $0x30] ss:$8 sps:$4 sm:$0xff]   ;;  %v339_v40 = vlaneseq }
   0xc   : > { %s1138_s26 = sshll.u32 %s1563_s25, 4  ;;  %v1257_v16 = vld [vmem:[%s1557_s3 + $0x24] ss:$8 sps:$4 sm:$0xff]   ;;  %400 = vmatprep.subr.bf16.mxu0 %v1254_v14  ;;  %v1259_v17 = vld [vmem:[%s1557_s3 + $0x20] ss:$8 sps:$4 sm:$0xff]   ;;  %v1314_v18 = vmov 0  }
   0xd   : > { %s273_s29 = scalar_lea.vmem %s1554_s0, %s1138_s26  ;;  %401 = vmatpush1.bf16.msra.mxu0 %v1256_v15  ;;  %424 = vmatprep.mubr.bf16.mxu0 %v1314_v18  ;;  %v1260_v19 = vld [vmem:[%s1557_s3 + $0x14] ss:$8 sps:$4 sm:$0xff]   ;;  %v1262_v20 = vld [vmem:[%s1557_s3 + $0x10] ss:$8 sps:$4 sm:$0xff]   ;;  %v1263_v21 = vld [vmem:[%s1557_s3 + $0x4] ss:$8 sps:$4 sm:$0xff]   ;;  %s278_s8 = scalar_lea.vmem %s1561_s7, %s1138_s26 }
   0xe   : > { %v1380_v0 = vld [vmem:[%s273_s29] sm:$0xff]  ;;  %v1382_v1 = vld [vmem:[%s273_s29 + $0x8] sm:$0xff]  ;;  %402 = vmatprep.subr.bf16.mxu0 %v1257_v16  ;;  %v340_v41 = vshrl.u32 %v339_v40, 7  ;;  %v1315_v42 = vmov 0.0   ;;  %vm1316_vm1 = vmmov 0   ;;  %vm440_vm2 = vcmask 130048  }
   0xf   : > { %v283_v2 = vsel %vm282_vm0, %v1380_v0, 0.0  ;;  %v286_v3 = vsel %vm282_vm0, %v1382_v1, 0.0  ;;  %v1265_v22 = vld [vmem:[%s1557_s3] ss:$8 sps:$4 sm:$0xff]   ;;  %1161 = vmatprep.subr.bf16.mxu1 %v1315_v42  ;;  %1163 = vmatprep.mubr.msk.bf16.mxu1 %vm1316_vm1, %v1315_v42  ;;  %vm953_vm3 = vcmask 261120   ;;  %vm956_vm4 = vcmask 392192  }
  0x10   : > { %284 = vadd.xlane.f32.xlu0 %v283_v2  ;;  %v1111_v31 = vld [vmem:[%s1555_s1] ss:$0 sm:$0xff]  ;;  %v341_v43 = vsub.s32 0, %v340_v41  ;;  %v345_v52 = vsub.s32 1, %v340_v41 }
  0x11   : > { %403 = vmatpush1.bf16.msra.mxu0 %v1259_v17  ;;  %v1112_v35 = vld [vmem:[%s1556_s2] ss:$0 sm:$0xff] }
  0x12   : > { %404 = vmatprep.subr.bf16.mxu0 %v1260_v19  ;;  %v337_v44 = vld [vmem:[%s1558_s4] sm:$0x3] }
  0x13   : > { %v342_v46 = vrot.slane %v337_v44, %v341_v43  ;;  %v346_v56 = vrot.slane %v337_v44, %v345_v52 }
  0x14   : > { %287 = vadd.xlane.f32.xlu0 %v286_v3 }
  0x15   : > { %405 = vmatpush1.bf16.msra.mxu0 %v1262_v20 }
  0x16   : > { %406 = vmatprep.subr.bf16.mxu0 %v1263_v21 }
  0x19   : > { %407 = vmatpush1.bf16.msra.mxu0 %v1265_v22 }
  0x1a   : > { %1185 = vmatprep.subr.bf16.mxu0 %v1315_v42 }
  0x99   : > { %v285_v4 = vpop.xlane.xlu0 %284 }
  0x9a   : > { %v290_v5 = vmul.f32 0.015625, %v285_v4 }
  0x9c   : > { %v292_v6 = vsub.f32 %v1380_v0, %v290_v5 }
  0x9d   : > { %v288_v7 = vpop.xlane.xlu0 %287 }
  0x9e   : > { %v291_v8 = vmul.f32 0.015625, %v288_v7  ;;  %v294_v9 = vmul.f32 %v292_v6, %v292_v6 }
  0xa0   : > { %v293_v10 = vsub.f32 %v1382_v1, %v291_v8  ;;  %v296_v11 = vsel %vm282_vm0, %v294_v9, 0.0 }
  0xa1   : > { %297 = vadd.xlane.f32.xlu1 %v296_v11 }
  0xa2   : > { %v295_v12 = vmul.f32 %v293_v10, %v293_v10 }
  0xa4   : > { %v299_v13 = vsel %vm282_vm0, %v295_v12, 0.0 }
  0xa5   : > { %300 = vadd.xlane.f32.xlu1 %v299_v13 }
 0x12a   : > { %v298_v23 = vpop.xlane.xlu1 %297 }
 0x12b   : > { %v302_v24 = vmul.f32 0.015625, %v298_v23 }
 0x12d   : > { %v304_v25 = vadd.f32 1e-05, %v302_v24 }
 0x12e   : > { %v301_v26 = vpop.xlane.xlu1 %300 }
 0x12f   : > { %1270 = vrsqrt.f32 %v304_v25  ;;  %v303_v27 = vmul.f32 0.015625, %v301_v26 }
 0x131   : > { %v305_v28 = vadd.f32 1e-05, %v303_v27 }
 0x133   : > { %1272 = vrsqrt.f32 %v305_v28 }
 0x13c   : > { %v1271_v29 = vpop.eup %1270 }
 0x13d   : > { %v308_v30 = vmul.f32 %v1271_v29, %v292_v6 }
 0x13f   : > { %v317_v34 = vmul.f32 %v1111_v31, %v308_v30 }
 0x140   : > { %v1273_v32 = vpop.eup %1272 }
 0x141   : > { %v309_v33 = vmul.f32 %v1273_v32, %v293_v10  ;;  %v326_v37 = vadd.f32 %v1112_v35, %v317_v34 }
 0x143   : > { %v318_v36 = vmul.f32 %v1111_v31, %v309_v33 }
 0x145   : > { %v327_v38 = vadd.f32 %v1112_v35, %v318_v36 }
 0x147   : > { %v328_v39 = vpack.c.bf16 %v327_v38, %v326_v37 }
 0x149   : > { %1121 = vmatmul.mubr.msk.bf16.vlgmr.msra.gmra.mxu0 %vm282_vm0, %v328_v39 }
 0x14a   : > { %1187 = vmatprep.mubr.msk.bf16.mxu0 %vm1316_vm1, %v1315_v42 }
 0x209   : > { %v426_v45 = vpop.f32.mrf.mxu0 }
 0x20a   : > { %v427_v49 = vadd.f32 %v426_v45, %v342_v46 }
 0x20b   : > { %v428_v47 = vpop.f32.mrf.mxu0 }
 0x20c   : > { %v429_v59 = vadd.f32 %v428_v47, %v346_v56 }
 0x20d   : > { %v430_v48 = vpop.f32.mrf.mxu0 }
 0x20e   : > { %v431_v50 = vadd.f32 %v430_v48, %v342_v46 }
 0x20f   : > { %v432_v54 = vpop.f32.mrf.mxu0 }
 0x210   : > { %v1432_v51 = vpack.c.bf16 %v431_v50, %v427_v49  ;;  %v433_v57 = vadd.f32 %v432_v54, %v346_v56 }
 0x212   : > { %438 = vrot.lane.b32.xlu0 %v1432_v51, %s1317_s9  ;;  %v1447_v60 = vpack.c.bf16 %v433_v57, %v429_v59 }
 0x216   : > { %557 = vrot.lane.b32.xlu0 %v1432_v51, %s1318_s10 }
 0x21a   : > { %683 = vrot.lane.b32.xlu0 %v1432_v51, %s1319_s11 }
 0x21e   : > { %681 = vrot.lane.b32.xlu0 %v1432_v51, %s1320_s12 }
 0x222   : > { %804 = vrot.lane.b32.xlu0 %v1432_v51, %s1321_s13 }
 0x284   : > { %v439_v53 = vpop.permute.xlu0 %438 }
 0x285   : > { %v445_v55 = vsel %vm440_vm2, %v439_v53, 0 }
 0x286   : > { %1162 = vmatpush3.bf16.xpose.msra.mxu1 %v445_v55 }
 0x287   : > { %1167 = vmatprep.subr.bf16.mxu1 %v1315_v42 }
 0x288   : > { %v1445_v58 = vpop.permute.xlu0 %557 }
 0x28c   : > { %v684_v61 = vpop.permute.xlu0 %683 }
 0x28d   : > { %v689_v62 = vsel %vm440_vm2, %v684_v61, 0  ;;  %1164 = vmatmul.mubr.msk.bf16.vlgmr.msra.gmra.mxu1 %vm440_vm2, %v1432_v51 }
 0x28e   : > { %1168 = vmatpush3.bf16.msra.mxu1 %v1447_v60  ;;  %1186 = vmatpush3.bf16.xpose.msra.mxu0 %v689_v62 }
 0x28f   : > { %1197 = vmatprep.subr.bf16.mxu0 %v1315_v42  ;;  %1169 = vmatprep.mubr.msk.bf16.mxu1 %vm1316_vm1, %v1315_v42 }
 0x290   : > { %1173 = vmatprep.subr.bf16.mxu1 %v1315_v42  ;;  %v682_v63 = vpop.permute.xlu0 %681 }
 0x294   : > { %v805_v33 = vpop.permute.xlu0 %804 }
 0x295   : > { %1188 = vmatmul.mubr.msk.bf16.vlgmr.msra.gmra.mxu0 %vm440_vm2, %v682_v63 }
 0x296   : > { %1199 = vmatprep.mubr.msk.bf16.mxu0 %vm1316_vm1, %v1315_v42 }
 0x34d   : > { %v481_v2 = vpop.f32.mrf.mxu1 }
 0x34e   : > { %v488_v3 = vmul.f32 0.25, %v481_v2 }
 0x34f   : > { %v1165_v4 = vpop.f32.mrf.mxu1 }
 0x350   : > { %v490_v5 = vsel %vm440_vm2, %v488_v3, -inf }
 0x351   : > { %491 = vmax.xlane.f32.xlu1 %v490_v5  ;;  %v484_v6 = vpop.f32.mrf.mxu1 }
 0x352   : > { %v489_v7 = vmul.f32 0.25, %v484_v6 }
 0x353   : > { %v1166_v8 = vpop.f32.mrf.mxu1 }
 0x354   : > { %v493_v9 = vsel %vm440_vm2, %v489_v7, -inf }
 0x355   : > { %494 = vmax.xlane.f32.xlu1 %v493_v9  ;;  %v725_v10 = vpop.f32.mrf.mxu0 }
 0x356   : > { %v732_v53 = vmul.f32 0.25, %v725_v10 }
 0x357   : > { %v1189_v11 = vpop.f32.mrf.mxu0 }
 0x358   : > { %v734_v57 = vsel %vm440_vm2, %v732_v53, -inf }
 0x359   : > { %v1462_v12 = vpop.f32.mrf.mxu0 }
 0x35a   : > { %v733_v56 = vmul.f32 0.25, %v1462_v12 }
 0x35b   : > { %v1190_v13 = vpop.f32.mrf.mxu0 }
 0x35c   : > { %v737_v59 = vsel %vm440_vm2, %v733_v56, -inf }
 0x3da   : > { %v492_v14 = vpop.xlane.xlu1 %491 }
 0x3db   : > { %v496_v15 = vsub.f32 %v488_v3, %v492_v14 }
 0x3dd   : > { %v498_v16 = vmul.f32 1.442695, %v496_v15 }
 0x3de   : > { %v495_v17 = vpop.xlane.xlu1 %494 }
 0x3df   : > { %1274 = vpow2.f32 %v498_v16  ;;  %v497_v18 = vsub.f32 %v489_v7, %v495_v17 }
 0x3e1   : > { %v500_v19 = vmul.f32 1.442695, %v497_v18 }
 0x3e3   : > { %1276 = vpow2.f32 %v500_v19 }
 0x3ec   : > { %v1275_v20 = vpop.eup %1274 }
 0x3ed   : > { %v502_v21 = vsel %vm440_vm2, %v1275_v20, 0.0 }
 0x3ee   : > { %503 = vadd.xlane.f32.xlu1 %v502_v21 }
 0x3f0   : > { %v1277_v22 = vpop.eup %1276 }
 0x3f1   : > { %v505_v23 = vsel %vm440_vm2, %v1277_v22, 0.0 }
 0x3f2   : > { %506 = vadd.xlane.f32.xlu1 %v505_v23 }
 0x403   : > { %559 = vrot.lane.b32.xlu1 %v1432_v51, %s1322_s14 }
 0x407   : > { %806 = vrot.lane.b32.xlu1 %v1432_v51, %s1323_s15 }
 0x477   : > { %v504_v24 = vpop.xlane.xlu1 %503 }
 0x478   : > { %1278 = vrcp.f32 %v504_v24 }
 0x47b   : > { %v507_v25 = vpop.xlane.xlu1 %506 }
 0x47c   : > { %1280 = vrcp.f32 %v507_v25 }
 0x47f   : > { %v560_v26 = vpop.permute.xlu1 %559 }
 0x480   : > { %v565_v35 = vsel %vm440_vm2, %v560_v26, 0 }
 0x483   : > { %v807_v27 = vpop.permute.xlu1 %806 }
 0x484   : > { %v812_v28 = vsel %vm440_vm2, %v807_v27, 0 }
 0x485   : > { %1198 = vmatpush3.bf16.xpose.msra.mxu0 %v812_v28  ;;  %v1279_v29 = vpop.eup %1278 }
 0x486   : > { %1209 = vmatprep.subr.bf16.mxu0 %v1315_v42  ;;  %v510_v31 = vmul.f32 %v1279_v29, %v1275_v20 }
 0x489   : > { %v1281_v30 = vpop.eup %1280 }
 0x48a   : > { %v511_v32 = vmul.f32 %v1281_v30, %v1277_v22 }
 0x48c   : > { %1200 = vmatmul.mubr.msk.bf16.vlgmr.msra.gmra.mxu0 %vm440_vm2, %v805_v33  ;;  %v512_v34 = vpack.c.bf16 %v511_v32, %v510_v31 }
 0x48d   : > { %1217 = vmatprep.mubr.msk.bf16.mxu0 %vm1316_vm1, %v1315_v42 }
 0x48e   : > { %1170 = vmatmul.mubr.msk.bf16.vlgmr.msra.gmra.mxu1 %vm440_vm2, %v512_v34 }
 0x48f   : > { %1174 = vmatpush3.bf16.xpose.msra.mxu1 %v565_v35  ;;  %1175 = vmatprep.mubr.msk.bf16.mxu1 %vm1316_vm1, %v1315_v42 }
 0x490   : > { %1179 = vmatprep.subr.bf16.mxu1 %v1315_v42 }
 0x496   : > { %1176 = vmatmul.mubr.msk.bf16.vlgmr.msra.gmra.mxu1 %vm440_vm2, %v1445_v58 }
 0x497   : > { %1181 = vmatprep.mubr.msk.bf16.mxu1 %vm1316_vm1, %v1315_v42 }
 0x54c   : > { %v848_v36 = vpop.f32.mrf.mxu0 }
 0x54d   : > { %v855_v48 = vmul.f32 0.25, %v848_v36 }
 0x54e   : > { %v1484_v37 = vpop.f32.mrf.mxu1  ;;  %v1201_v38 = vpop.f32.mrf.mxu0 }
 0x54f   : > { %v857_v55 = vsel %vm440_vm2, %v855_v48, -inf }
 0x550   : > { %v1171_v39 = vpop.f32.mrf.mxu1  ;;  %v851_v40 = vpop.f32.mrf.mxu0 }
 0x551   : > { %v856_v58 = vmul.f32 0.25, %v851_v40 }
 0x552   : > { %v1486_v41 = vpop.f32.mrf.mxu1  ;;  %v1202_v43 = vpop.f32.mrf.mxu0 }
 0x553   : > { %v860_v61 = vsel %vm440_vm2, %v856_v58, -inf }
 0x554   : > { %v1172_v44 = vpop.f32.mrf.mxu1 }
 0x556   : > { %v601_v45 = vpop.f32.mrf.mxu1 }
 0x557   : > { %v608_v46 = vmul.f32 0.25, %v601_v45 }
 0x558   : > { %v1177_v47 = vpop.f32.mrf.mxu1 }
 0x559   : > { %v610_v49 = vsel %vm440_vm2, %v608_v46, -inf }
 0x55a   : > { %611 = vmax.xlane.f32.xlu1 %v610_v49  ;;  %v604_v50 = vpop.f32.mrf.mxu1 }
 0x55b   : > { %v609_v51 = vmul.f32 0.25, %v604_v50 }
 0x55c   : > { %v1178_v52 = vpop.f32.mrf.mxu1 }
 0x55d   : > { %v613_v54 = vsel %vm440_vm2, %v609_v51, -inf }
 0x55e   : > { %614 = vmax.xlane.f32.xlu0 %v613_v54  ;;  %858 = vmax.xlane.f32.xlu1 %v857_v55 }
 0x562   : > { %735 = vmax.xlane.f32.xlu0 %v734_v57 }
 0x566   : > { %738 = vmax.xlane.f32.xlu0 %v737_v59  ;;  %v1267_v59 = vld [vmem:[%s1559_s5 + $0x10] sm:$0xff]  }
 0x56a   : > { %861 = vmax.xlane.f32.xlu0 %v860_v61 }
 0x5e3   : > { %v612_v62 = vpop.xlane.xlu1 %611 }
 0x5e4   : > { %v616_v6 = vsub.f32 %v608_v46, %v612_v62 }
 0x5e6   : > { %v618_v12 = vmul.f32 1.442695, %v616_v6 }
 0x5e7   : > { %v859_v63 = vpop.xlane.xlu1 %858  ;;  %v615_v2 = vpop.xlane.xlu0 %614 }
 0x5e8   : > { %v863_v3 = vsub.f32 %v855_v48, %v859_v63  ;;  %v617_v8 = vsub.f32 %v609_v51, %v615_v2  ;;  %v1268_v63 = vld [vmem:[%s1559_s5 + $0x8] sm:$0xff]  }
 0x5ea   : > { %v865_v7 = vmul.f32 1.442695, %v863_v3  ;;  %v620_v13 = vmul.f32 1.442695, %v617_v8 }
 0x5eb   : > { %v736_v4 = vpop.xlane.xlu0 %735 }
 0x5ec   : > { %v740_v5 = vsub.f32 %v732_v53, %v736_v4 }
 0x5ee   : > { %v742_v9 = vmul.f32 1.442695, %v740_v5  ;;  %v1269_v5 = vld [vmem:[%s1559_s5] sm:$0xff]  }
 0x5ef   : > { %v739_v10 = vpop.xlane.xlu0 %738 }
 0x5f0   : > { %1282 = vpow2.f32 %v742_v9  ;;  %v741_v11 = vsub.f32 %v733_v56, %v739_v10  ;;  %v1266_v56 = vld [vmem:[%s1559_s5 + $0x18] sm:$0xff]  }
 0x5f1   : > { %1284 = vpow2.f32 %v865_v7  ;;  %1210 = vmatpush3.bf16.msra.mxu0 %v1266_v56 }
 0x5f2   : > { %v744_v14 = vmul.f32 1.442695, %v741_v11  ;;  %1211 = vmatprep.subr.bf16.mxu0 %v1315_v42 }
 0x5f3   : > { %v862_v15 = vpop.xlane.xlu0 %861 }
 0x5f4   : > { %1286 = vpow2.f32 %v744_v14  ;;  %v864_v16 = vsub.f32 %v856_v58, %v862_v15 }
 0x5f5   : > { %1288 = vpow2.f32 %v618_v12  ;;  %1212 = vmatpush3.bf16.msra.mxu0 %v1267_v59 }
 0x5f6   : > { %1290 = vpow2.f32 %v620_v13  ;;  %v867_v17 = vmul.f32 1.442695, %v864_v16  ;;  %1213 = vmatprep.subr.bf16.mxu0 %v1315_v42 }
 0x5f8   : > { %1292 = vpow2.f32 %v867_v17 }
 0x5f9   : > { %1214 = vmatpush3.bf16.msra.mxu0 %v1268_v63 }
 0x5fa   : > { %1215 = vmatprep.subr.bf16.mxu0 %v1315_v42 }
 0x5fd   : > { %v1283_v18 = vpop.eup %1282  ;;  %1216 = vmatpush3.bf16.msra.mxu0 %v1269_v5 }
 0x5fe   : > { %v746_v19 = vsel %vm440_vm2, %v1283_v18, 0.0  ;;  %v1285_v20 = vpop.eup %1284 }
 0x5ff   : > { %747 = vadd.xlane.f32.xlu1 %v746_v19  ;;  %v869_v23 = vsel %vm440_vm2, %v1285_v20, 0.0 }
 0x601   : > { %v1287_v21 = vpop.eup %1286 }
 0x602   : > { %v1289_v22 = vpop.eup %1288  ;;  %v749_v24 = vsel %vm440_vm2, %v1287_v21, 0.0 }
 0x603   : > { %v1291_v25 = vpop.eup %1290  ;;  %870 = vadd.xlane.f32.xlu1 %v869_v23  ;;  %750 = vadd.xlane.f32.xlu0 %v749_v24  ;;  %v622_v26 = vsel %vm440_vm2, %v1289_v22, 0.0 }
 0x604   : > { %v625_v27 = vsel %vm440_vm2, %v1291_v25, 0.0 }
 0x605   : > { %v1293_v28 = vpop.eup %1292 }
 0x606   : > { %v872_v29 = vsel %vm440_vm2, %v1293_v28, 0.0 }
 0x607   : > { %623 = vadd.xlane.f32.xlu1 %v622_v26  ;;  %626 = vadd.xlane.f32.xlu0 %v625_v27 }
 0x60b   : > { %873 = vadd.xlane.f32.xlu0 %v872_v29  ;;  %v1130_v29 = vld [vmem:[%s1560_s6] ss:$0 sm:$0xff] }
 0x618   : > { %634 = vrot.lane.b32.xlu1 %v1447_v60, %s1318_s10 }
 0x61c   : > { %880 = vrot.lane.b32.xlu1 %v1447_v60, %s1321_s13 }
 0x621   : > { %757 = vrot.lane.b32.xlu0 %v1447_v60, %s1320_s12 }
 0x688   : > { %v748_v30 = vpop.xlane.xlu1 %747 }
 0x68c   : > { %v871_v31 = vpop.xlane.xlu1 %870  ;;  %v751_v32 = vpop.xlane.xlu0 %750 }
 0x690   : > { %v624_v33 = vpop.xlane.xlu1 %623  ;;  %v627_v34 = vpop.xlane.xlu0 %626 }
 0x691   : > { %1294 = vrcp.f32 %v624_v33 }
 0x692   : > { %1296 = vrcp.f32 %v627_v34 }
 0x693   : > { %1298 = vrcp.f32 %v751_v32 }
 0x694   : > { %v635_v35 = vpop.permute.xlu1 %634  ;;  %1300 = vrcp.f32 %v748_v30  ;;  %v874_v36 = vpop.xlane.xlu0 %873 }
 0x695   : > { %1180 = vmatpush3.bf16.msra.mxu1 %v635_v35  ;;  %1302 = vrcp.f32 %v874_v36 }
 0x696   : > { %1191 = vmatprep.subr.bf16.mxu1 %v1315_v42  ;;  %1304 = vrcp.f32 %v871_v31 }
 0x698   : > { %v758_v45 = vpop.permute.xlu0 %757  ;;  %v881_v51 = vpop.permute.xlu1 %880 }
 0x69e   : > { %v1295_v38 = vpop.eup %1294 }
 0x69f   : > { %v1297_v39 = vpop.eup %1296  ;;  %v630_v40 = vmul.f32 %v1295_v38, %v1289_v22 }
 0x6a0   : > { %v631_v60 = vmul.f32 %v1297_v39, %v1291_v25  ;;  %v1299_v44 = vpop.eup %1298 }
 0x6a1   : > { %v1301_v46 = vpop.eup %1300  ;;  %v755_v47 = vmul.f32 %v1299_v44, %v1287_v21 }
 0x6a2   : > { %v632_v43 = vpack.c.bf16 %v631_v60, %v630_v40  ;;  %v754_v48 = vmul.f32 %v1301_v46, %v1283_v18  ;;  %v1303_v50 = vpop.eup %1302 }
 0x6a3   : > { %v1305_v52 = vpop.eup %1304  ;;  %v878_v53 = vmul.f32 %v1303_v50, %v1293_v28 }
 0x6a4   : > { %1182 = vmatmul.mubr.msk.bf16.vlgmr.msra.gmra.mxu1 %vm440_vm2, %v632_v43  ;;  %v756_v49 = vpack.c.bf16 %v755_v47, %v754_v48  ;;  %v877_v54 = vmul.f32 %v1305_v52, %v1285_v20 }
 0x6a5   : > { %1192 = vmatpush3.bf16.msra.mxu1 %v758_v45  ;;  %1193 = vmatprep.mubr.msk.bf16.mxu1 %vm1316_vm1, %v1315_v42 }
 0x6a6   : > { %1203 = vmatprep.subr.bf16.mxu1 %v1315_v42  ;;  %v879_v55 = vpack.c.bf16 %v878_v53, %v877_v54 }
 0x6ac   : > { %1194 = vmatmul.mubr.msk.bf16.vlgmr.msra.gmra.mxu1 %vm440_vm2, %v756_v49 }
 0x6ad   : > { %1204 = vmatpush3.bf16.msra.mxu1 %v881_v51  ;;  %1205 = vmatprep.mubr.msk.bf16.mxu1 %vm1316_vm1, %v1315_v42 }
 0x6b4   : > { %1206 = vmatmul.mubr.msk.bf16.vlgmr.msra.gmra.mxu1 %vm440_vm2, %v879_v55 }
 0x764   : > { %v674_v57 = vpop.f32.mrf.mxu1 }
 0x766   : > { %v1183_v58 = vpop.f32.mrf.mxu1 }
 0x768   : > { %v677_v61 = vpop.f32.mrf.mxu1 }
 0x769   : > { %v1239_v62 = vpack.i.bf16 %v677_v61, %v674_v57 }
 0x76a   : > { %v1184_v2 = vpop.f32.mrf.mxu1 }
 0x76b   : > { %1240 = vrot.lane.b32.xlu1 %v1239_v62, %s1323_s15 }
 0x76c   : > { %v797_v3 = vpop.f32.mrf.mxu1 }
 0x76e   : > { %v1195_v4 = vpop.f32.mrf.mxu1 }
 0x770   : > { %v800_v6 = vpop.f32.mrf.mxu1 }
 0x771   : > { %v1244_v7 = vpack.i.bf16 %v800_v6, %v797_v3 }
 0x772   : > { %v1196_v8 = vpop.f32.mrf.mxu1 }
 0x773   : > { %1245 = vrot.lane.b32.xlu1 %v1244_v7, %s1319_s11 }
 0x774   : > { %v920_v9 = vpop.f32.mrf.mxu1 }
 0x776   : > { %v1207_v10 = vpop.f32.mrf.mxu1 }
 0x778   : > { %v923_v11 = vpop.f32.mrf.mxu1 }
 0x779   : > { %v1249_v12 = vpack.i.bf16 %v923_v11, %v920_v9 }
 0x77a   : > { %v1208_v13 = vpop.f32.mrf.mxu1 }
 0x77b   : > { %1250 = vrot.lane.b32.xlu0 %v1249_v12, %s1322_s14 }
 0x7dd   : > { %v1241_v14 = vpop.permute.xlu1 %1240 }
 0x7de   : > { %v1243_v42 = vunpack.i.h.bf16 %v1241_v14  ;;  %v1242_v16 = vunpack.i.l.bf16 %v1241_v14 }
 0x7e0   : > { %v952_v20 = vsel %vm440_vm2, %v1486_v41, %v1243_v42  ;;  %v951_v21 = vsel %vm440_vm2, %v1484_v37, %v1242_v16 }
 0x7e5   : > { %v1246_v15 = vpop.permute.xlu1 %1245 }
 0x7e6   : > { %v1248_v17 = vunpack.i.h.bf16 %v1246_v15  ;;  %v1247_v18 = vunpack.i.l.bf16 %v1246_v15 }
 0x7e8   : > { %v955_v24 = vsel %vm953_vm3, %v952_v20, %v1248_v17  ;;  %v954_v25 = vsel %vm953_vm3, %v951_v21, %v1247_v18 }
 0x7ed   : > { %v1251_v19 = vpop.permute.xlu0 %1250 }
 0x7ee   : > { %v1253_v22 = vunpack.i.h.bf16 %v1251_v19  ;;  %v1252_v23 = vunpack.i.l.bf16 %v1251_v19 }
 0x7f0   : > { %v958_v26 = vsel %vm956_vm4, %v955_v24, %v1253_v22  ;;  %v957_v27 = vsel %vm956_vm4, %v954_v25, %v1252_v23 }
 0x7f1   : > { %v959_v28 = vpack.c.bf16 %v958_v26, %v957_v27 }
 0x7f3   : > { %1218 = vmatmul.mubr.msk.bf16.vlgmr.msra.gmra.mxu0 %vm282_vm0, %v959_v28 }
 0x8b3   : > { %v1036_v30 = vpop.f32.mrf.mxu0 }
 0x8b4   : > { %v1037_v31 = vadd.f32 %v1130_v29, %v1036_v30 }
 0x8b5   : > { %v1219_v37 = vpop.f32.mrf.mxu0 }
 0x8b6   : > { %v1043_v41 = vadd.f32 %v1037_v31, %v1380_v0 }
 0x8b7   : > { %v1039_v32 = vpop.f32.mrf.mxu0 }
 0x8b8   : > { %1045 = vst.msk [vmem:[%s278_s8] sm:$0xff] %vm282_vm0, %v1043_v41  ;;  %v1040_v33 = vadd.f32 %v1130_v29, %v1039_v32 }
 0x8b9   : > { %v1220_v34 = vpop.f32.mrf.mxu0 }
 0x8ba   : > { %v1044_v35 = vadd.f32 %v1040_v33, %v1382_v1 }
 0x8bc   : > { %1046 = vst.msk [vmem:[%s278_s8 + $0x8] sm:$0xff] %vm282_vm0, %v1044_v35 }
 0x8bd PF: > { %s17_s24 = sadd.s32 1, %s1312_s24  }
 0x8be   : > { %p14_p4 = scmp.ge.s32.totalorder %s17_s24, 4  }
 0x8c0   :  { %16 = sbr.rel (!%p14_p4) target bundleno = 1 (0x1), region = 78 }

// kernel: multimodal_moe_forward.9
= control target key start
LH: loop header
LB: loop body
LE: loop exit
PB: predicated region body
PF: predicated region fallthrough
CT: control target
= control target key end

     0   :  { %s1249_s24 = smov 0   ;;  %s1251_s25 = smov 0   ;;  %s1435_s0 = inlined_call_operand.vmem [shape: f32[32,64], index: 0, kind: input, shape index: {}]   ;;  %s1436_s1 = inlined_call_operand.vmem [shape: bf16[32,64], index: 1, kind: input, shape index: {}]   ;;  %s1437_s2 = inlined_call_operand.vmem [shape: bf16[6,64,256], index: 2, kind: input, shape index: {}]   ;;  %s1438_s3 = inlined_call_operand.vmem [shape: f32[6,1,256], index: 3, kind: input, shape index: {}]   ;;  %s1439_s4 = inlined_call_operand.vmem [shape: bf16[6,256,64], index: 4, kind: input, shape index: {}]   ;;  %s1440_s5 = inlined_call_operand.vmem [shape: f32[6,1,64], index: 5, kind: input, shape index: {}]   ;;  %s1441_s6 = inlined_call_operand.vmem [shape: f32[6,32,1], index: 6, kind: input, shape index: {}]   ;;  %s1442_s7 = inlined_call_operand.vmem [shape: f32[32,64], index: 7, kind: output, shape index: {}]  }
   0x1   :  { %s1253_s26 = smov 0  }
   0x2 LB: > { %s26_s27 = sadd.s32 1, %s1201_s25  ;;  %p1035_p0 = scmp.ge.s32.totalorder %s1205_s26, 1  ;;  %s1205_s26 = sphi %s1253_s26, %s17_s26   ;;  %s1201_s25 = sphi %s1251_s25, %s1444_s25   ;;  %s1197_s24 = sphi %s1249_s24, %s1443_s24  }
   0x3   : > { %p27_p1 = scmp.ge.s32.totalorder %s26_s27, 6  ;;  %p315_p2 = scmp.lt.s32.totalorder %s1205_s26, 7 }
   0x5   : > { %s1446_s27 = smov (%p27_p1, %s26_s27), 0  ;;  %p316_p3 = pnand %p1035_p0, %p315_p2 }
   0x6   : > { %p390_p4 = scmp.lt.s32.totalorder (!%p316_p3), %s1197_s24, 5  ;;  %p1043_p5 = scmp.ne.s32.totalorder (!%p316_p3), %s1197_s24, 0 }
   0x7   : > { %319 = sbr.rel (%p316_p3) target bundleno = 504 (0x1f8), region = 48 }
   0xc   : > { %s1271_s28 = scalar_select %p390_p4, %s1197_s24, 5 }
   0xe   : > { %s1078_s29 = sshll.u32 %s1271_s28, 6  ;;  %s1038_s30 = sshll.u32 %s1271_s28, 1 }
   0xf   : > { %s1278_s10 = scalar_lea.vmem %s1437_s2, %s1078_s29  ;;  %s1283_s13 = scalar_lea.vmem %s1438_s3, %s1038_s30 }
  0x10   : > { %s1079_s14 = sshll.u32 %s1271_s28, 7  ;;  %s406_s17 = scalar_lea.vmem %s1440_s5, %s1271_s28 }
  0x11   : > { %s1293_s20 = scalar_lea.vmem %s1439_s4, %s1079_s14  ;;  %s1080_s21 = sshll.u32 %s1271_s28, 5 }
  0x12   : > { %s1299_s29 = scalar_lea.vmem %s1441_s6, %s1080_s21  ;;  %427 = sbr.rel (%p1043_p5) target bundleno = 26 (0x1a), region = 52 }
  0x17   : > { %vm428_vm0 = vcmask 523264   ;;  %v1207_v0 = vmov 0.0  }
  0x18   : > { %429 = vst.msk [vmem:[#allocation2] sm:$0xff] %vm428_vm0, %v1207_v0  ;;  %430 = vst.msk [vmem:[#allocation2 + $0x8] sm:$0xff] %vm428_vm0, %v1207_v0 }
  0x19   : > { %431 = vst.msk [vmem:[#allocation2 + $0x10] sm:$0xff] %vm428_vm0, %v1207_v0  ;;  %432 = vst.msk [vmem:[#allocation2 + $0x18] sm:$0xff] %vm428_vm0, %v1207_v0 }
  0x1a PF: > { %v1137_v1 = vld [vmem:[%s1278_s10 + $0x34] ss:$8 sps:$4 sm:$0xff]   ;;  %v1139_v2 = vld [vmem:[%s1278_s10 + $0x30] ss:$8 sps:$4 sm:$0xff]   ;;  %v1208_v3 = vmov 0   ;;  %vm507_vm1 = vcmask 523264   ;;  %v447_v32 = vlaneseq }
  0x1b   : > { %546 = vmatprep.mubr.bf16.mxu0 %v1208_v3  ;;  %1135 = vset.pattern.permute.xlu0 %v1208_v3  ;;  %v1140_v4 = vld [vmem:[%s1278_s10 + $0x24] ss:$8 sps:$4 sm:$0xff]   ;;  %v1142_v5 = vld [vmem:[%s1278_s10 + $0x20] ss:$8 sps:$4 sm:$0xff]   ;;  %v1143_v6 = vld [vmem:[%s1278_s10 + $0x14] ss:$8 sps:$4 sm:$0xff]  }
  0x1c   : > { %522 = vmatprep.subr.bf16.mxu0 %v1137_v1  ;;  %1136 = vset.pattern.permute.xlu1 %v1208_v3  ;;  %v1145_v7 = vld [vmem:[%s1278_s10 + $0x10] ss:$8 sps:$4 sm:$0xff]   ;;  %v1146_v8 = vld [vmem:[%s1278_s10 + $0x4] ss:$8 sps:$4 sm:$0xff]   ;;  %v1148_v9 = vld [vmem:[%s1278_s10] ss:$8 sps:$4 sm:$0xff]  }
  0x1d   : > { %523 = vmatpush1.bf16.msra.mxu0 %v1139_v2  ;;  %v1149_v10 = vld [vmem:[%s1436_s1] sm:$0xff]   ;;  %v1150_v11 = vld [vmem:[%s1436_s1 + $0x8] sm:$0xff]   ;;  %v1151_v12 = vld [vmem:[%s1293_s20 + $0x78] sm:$0xff]   ;;  %v448_v33 = vshrl.u32 %v447_v32, 7  ;;  %p1073_p6 = scmp.ne.s32.totalorder %s1197_s24, 5 }
  0x1e   : > { %524 = vmatprep.subr.bf16.mxu0 %v1140_v4  ;;  %v1152_v13 = vld [vmem:[%s1293_s20 + $0x38] sm:$0xff]   ;;  %1081 = vmatprep.subr.bf16.mxu1 %v1151_v12  ;;  %v1153_v14 = vld [vmem:[%s1293_s20 + $0x70] sm:$0xff]   ;;  %v1155_v16 = vld [vmem:[%s1293_s20 + $0x68] sm:$0xff]  }
  0x1f   : > { %1082 = vmatpush3.bf16.msra.mxu1 %v1152_v13  ;;  %v1154_v15 = vld [vmem:[%s1293_s20 + $0x30] sm:$0xff]   ;;  %v1156_v17 = vld [vmem:[%s1293_s20 + $0x28] sm:$0xff]   ;;  %v1157_v18 = vld [vmem:[%s1293_s20 + $0x60] sm:$0xff]   ;;  %v449_v34 = vsub.s32 0, %v448_v33  ;;  %v453_v36 = vsub.s32 1, %v448_v33 }
  0x20   : > { %1083 = vmatprep.subr.bf16.mxu1 %v1153_v14  ;;  %v1158_v19 = vld [vmem:[%s1293_s20 + $0x20] sm:$0xff]   ;;  %v1159_v20 = vld [vmem:[%s1293_s20 + $0x58] sm:$0xff]   ;;  %v1161_v22 = vld [vmem:[%s1293_s20 + $0x50] sm:$0xff]  }
  0x21   : > { %525 = vmatpush1.bf16.msra.mxu0 %v1142_v5  ;;  %v1160_v21 = vld [vmem:[%s1293_s20 + $0x18] sm:$0xff]   ;;  %v1162_v23 = vld [vmem:[%s1293_s20 + $0x10] sm:$0xff]   ;;  %v1163_v24 = vld [vmem:[%s1293_s20 + $0x48] sm:$0xff]  }
  0x22   : > { %526 = vmatprep.subr.bf16.mxu0 %v1143_v6  ;;  %v1164_v25 = vld [vmem:[%s1293_s20 + $0x8] sm:$0xff]   ;;  %v1165_v26 = vld [vmem:[%s1293_s20 + $0x40] sm:$0xff]   ;;  %v833_v29 = vld [vmem:[%s1299_s29 + $0x10] sm:$0xff] }
  0x23   : > { %1084 = vmatpush3.bf16.msra.mxu1 %v1154_v15  ;;  %v1166_v27 = vld [vmem:[%s1293_s20] sm:$0xff]   ;;  %847 = vperm.xlu1 %1136, %v833_v29   ;;  %v832_v30 = vld [vmem:[%s1299_s29 + $0x8] sm:$0xff]  ;;  %v834_v31 = vld [vmem:[%s1299_s29 + $0x18] sm:$0xff] }
  0x24   : > { %1085 = vmatprep.subr.bf16.mxu1 %v1155_v16  ;;  %v831_v28 = vld [vmem:[%s1299_s29] sm:$0xff] }
  0x25   : > { %527 = vmatpush1.bf16.msra.mxu0 %v1145_v7  ;;  %837 = vperm.xlu0 %1135, %v831_v28   ;;  %v445_v35 = vld [vmem:[%s1283_s13] sm:$0x3] }
  0x26   : > { %528 = vmatprep.subr.bf16.mxu0 %v1146_v8  ;;  %v450_v37 = vrot.slane %v445_v35, %v449_v34  ;;  %v454_v38 = vrot.slane %v445_v35, %v453_v36 }
  0x27   : > { %1086 = vmatpush3.bf16.msra.mxu1 %v1156_v17  ;;  %852 = vperm.xlu1 %1136, %v834_v31  }
  0x28   : > { %1087 = vmatprep.subr.bf16.mxu1 %v1157_v18 }
  0x29   : > { %529 = vmatpush1.bf16.msra.mxu0 %v1148_v9  ;;  %842 = vperm.xlu0 %1135, %v832_v30  }
  0x2b   : > { %1088 = vmatpush3.bf16.msra.mxu1 %v1158_v19 }
  0x2c   : > { %1054 = vmatmul.mubr.msk.bf16.vlgmr.msra.gmra.mxu0 %vm507_vm1, %v1149_v10  ;;  %1089 = vmatprep.subr.bf16.mxu1 %v1159_v20 }
  0x2d   : > { %556 = vmatprep.mubr.bf16.mxu0 %v1208_v3 }
  0x2f   : > { %1090 = vmatpush3.bf16.msra.mxu1 %v1160_v21 }
  0x30   : > { %1091 = vmatprep.subr.bf16.mxu1 %v1161_v22 }
  0x33   : > { %1092 = vmatpush3.bf16.msra.mxu1 %v1162_v23 }
  0x34   : > { %1055 = vmatmul.mubr.msk.bf16.gmra.mxu0 %vm507_vm1, %v1150_v11  ;;  %1093 = vmatprep.subr.bf16.mxu1 %v1163_v24 }
  0x37   : > { %1094 = vmatpush3.bf16.msra.mxu1 %v1164_v25 }
  0x38   : > { %1095 = vmatprep.subr.bf16.mxu1 %v1165_v26 }
  0x3b   : > { %1096 = vmatpush3.bf16.msra.mxu1 %v1166_v27 }
  0xec   : > { %v548_v39 = vpop.f32.mrf.mxu0 }
  0xed   : > { %v1339_v40 = vadd.f32 %v548_v39, %v450_v37 }
  0xee   : > { %v550_v41 = vpop.f32.mrf.mxu0 }
  0xef   : > { %v567_v42 = vmul.f32 %v1339_v40, %v1339_v40  ;;  %v1343_v43 = vadd.f32 %v550_v41, %v454_v38 }
  0xf0   : > { %v552_v44 = vpop.f32.mrf.mxu0 }
  0xf1   : > { %v575_v45 = vmul.f32 %v567_v42, %v1339_v40  ;;  %v568_v46 = vmul.f32 %v1343_v43, %v1343_v43  ;;  %v1348_v47 = vadd.f32 %v552_v44, %v450_v37 }
  0xf2   : > { %v554_v48 = vpop.f32.mrf.mxu0 }
  0xf3   : > { %v583_v49 = vmul.f32 0.044715, %v575_v45  ;;  %v576_v50 = vmul.f32 %v568_v46, %v1343_v43  ;;  %v569_v51 = vmul.f32 %v1348_v47, %v1348_v47  ;;  %v1353_v52 = vadd.f32 %v554_v48, %v454_v38 }
  0xf4   : > { %v558_v53 = vpop.f32.mrf.mxu0 }
  0xf5   : > { %v591_v54 = vadd.f32 %v583_v49, %v1339_v40  ;;  %v584_v55 = vmul.f32 0.044715, %v576_v50  ;;  %v577_v56 = vmul.f32 %v569_v51, %v1348_v47  ;;  %v570_v57 = vmul.f32 %v1353_v52, %v1353_v52 }
  0xf6   : > { %v1359_v58 = vadd.f32 %v558_v53, %v450_v37  ;;  %v560_v59 = vpop.f32.mrf.mxu0 }
  0xf7   : > { %v599_v60 = vmul.f32 0.7978846, %v591_v54  ;;  %v592_v61 = vadd.f32 %v584_v55, %v1343_v43  ;;  %v585_v62 = vmul.f32 0.044715, %v577_v56  ;;  %v578_v63 = vmul.f32 %v570_v57, %v1353_v52 }
  0xf8   : > { %v571_v0 = vmul.f32 %v1359_v58, %v1359_v58  ;;  %v1365_v1 = vadd.f32 %v560_v59, %v454_v38  ;;  %v562_v2 = vpop.f32.mrf.mxu0 }
  0xf9   : > { %v593_v3 = vadd.f32 %v585_v62, %v1348_v47  ;;  %v586_v4 = vmul.f32 0.044715, %v578_v63  ;;  %v1368_v5 = vadd.f32 %v562_v2, %v450_v37  ;;  %1167 = vtanh.f32 %v599_v60 }
  0xfa   : > { %v579_v6 = vmul.f32 %v571_v0, %v1359_v58  ;;  %v572_v7 = vmul.f32 %v1365_v1, %v1365_v1  ;;  %v564_v8 = vpop.f32.mrf.mxu0  ;;  %v600_v9 = vmul.f32 0.7978846, %v592_v61 }
  0xfb   : > { %v601_v10 = vmul.f32 0.7978846, %v593_v3  ;;  %v594_v11 = vadd.f32 %v586_v4, %v1353_v52  ;;  %v573_v12 = vmul.f32 %v1368_v5, %v1368_v5  ;;  %v565_v13 = vadd.f32 %v564_v8, %v454_v38  ;;  %v1056_v8 = vld [vmem:[%s406_s17] ss:$0 sm:$0xff] }
  0xfc   : > { %v587_v14 = vmul.f32 0.044715, %v579_v6  ;;  %v580_v15 = vmul.f32 %v572_v7, %v1365_v1  ;;  %1169 = vtanh.f32 %v600_v9  ;;  %v838_v9 = vpop.permute.xlu0 %837 }
  0xfd   : > { %1171 = vtanh.f32 %v601_v10  ;;  %v581_v16 = vmul.f32 %v573_v12, %v1368_v5  ;;  %v574_v17 = vmul.f32 %v565_v13, %v565_v13  ;;  %v602_v18 = vmul.f32 0.7978846, %v594_v11  ;;  %v827_v12 = vld [vmem:[#allocation2] sm:$0xff] }
  0xfe   : > { %v595_v19 = vadd.f32 %v587_v14, %v1359_v58  ;;  %v588_v20 = vmul.f32 0.044715, %v580_v15 }
  0xff   : > { %v589_v21 = vmul.f32 0.044715, %v581_v16  ;;  %v582_v22 = vmul.f32 %v574_v17, %v565_v13  ;;  %1173 = vtanh.f32 %v602_v18  ;;  %v828_v18 = vld [vmem:[#allocation2 + $0x8] sm:$0xff] }
 0x100   : > { %v603_v23 = vmul.f32 0.7978846, %v595_v19  ;;  %v596_v24 = vadd.f32 %v588_v20, %v1365_v1  ;;  %v843_v15 = vpop.permute.xlu0 %842 }
 0x101   : > { %v597_v25 = vadd.f32 %v589_v21, %v1368_v5  ;;  %v590_v26 = vmul.f32 0.044715, %v582_v22  ;;  %v848_v22 = vpop.permute.xlu1 %847 }
 0x102   : > { %1175 = vtanh.f32 %v603_v23  ;;  %v604_v27 = vmul.f32 0.7978846, %v596_v24 }
 0x103   : > { %v605_v28 = vmul.f32 0.7978846, %v597_v25  ;;  %v598_v29 = vadd.f32 %v590_v26, %v565_v13  ;;  %v829_v26 = vld [vmem:[#allocation2 + $0x10] sm:$0xff] }
 0x104   : > { %1177 = vtanh.f32 %v604_v27 }
 0x105   : > { %1179 = vtanh.f32 %v605_v28  ;;  %v606_v30 = vmul.f32 0.7978846, %v598_v29 }
 0x106   : > { %v1168_v31 = vpop.eup %1167 }
 0x107   : > { %1181 = vtanh.f32 %v606_v30  ;;  %v615_v35 = vadd.f32 1.0, %v1168_v31 }
 0x109   : > { %v1170_v32 = vpop.eup %1169  ;;  %v623_v42 = vmul.f32 0.5, %v615_v35 }
 0x10a   : > { %v1172_v33 = vpop.eup %1171  ;;  %v616_v34 = vadd.f32 1.0, %v1170_v32  ;;  %v853_v32 = vpop.permute.xlu1 %852 }
 0x10b   : > { %v617_v36 = vadd.f32 1.0, %v1172_v33  ;;  %v631_v53 = vmul.f32 %v623_v42, %v1339_v40  ;;  %v830_v33 = vld [vmem:[#allocation2 + $0x18] sm:$0xff] }
 0x10c   : > { %v1174_v37 = vpop.eup %1173  ;;  %v624_v39 = vmul.f32 0.5, %v616_v34 }
 0x10d   : > { %v618_v38 = vadd.f32 1.0, %v1174_v37  ;;  %v625_v41 = vmul.f32 0.5, %v617_v36 }
 0x10e   : > { %v632_v49 = vmul.f32 %v624_v39, %v1343_v43 }
 0x10f   : > { %v1176_v44 = vpop.eup %1175  ;;  %v626_v45 = vmul.f32 0.5, %v618_v38  ;;  %v633_v46 = vmul.f32 %v625_v41, %v1348_v47 }
 0x110   : > { %v619_v55 = vadd.f32 1.0, %v1176_v44 }
 0x111   : > { %v1178_v48 = vpop.eup %1177  ;;  %v634_v50 = vmul.f32 %v626_v45, %v1353_v52  ;;  %v639_v60 = vpack.c.bf16 %v633_v46, %v631_v53 }
 0x112   : > { %v1180_v51 = vpop.eup %1179  ;;  %v620_v54 = vadd.f32 1.0, %v1178_v48  ;;  %v627_v47 = vmul.f32 0.5, %v619_v55 }
 0x113   : > { %v640_v56 = vpack.c.bf16 %v634_v50, %v632_v49  ;;  %v621_v57 = vadd.f32 1.0, %v1180_v51 }
 0x114   : > { %v1182_v59 = vpop.eup %1181  ;;  %v628_v62 = vmul.f32 0.5, %v620_v54  ;;  %v635_v40 = vmul.f32 %v627_v47, %v1359_v58 }
 0x115   : > { %810 = vmatprep.mubr.bf16.mxu1 %v640_v56  ;;  %v622_v61 = vadd.f32 1.0, %v1182_v59  ;;  %v629_v63 = vmul.f32 0.5, %v621_v57 }
 0x116   : > { %811 = vmatmul.mubr.bf16.vlgmr.msra.gmra.mxu1 %v639_v60  ;;  %v636_v52 = vmul.f32 %v628_v62, %v1365_v1 }
 0x117   : > { %v630_v0 = vmul.f32 0.5, %v622_v61  ;;  %v637_v43 = vmul.f32 %v629_v63, %v1368_v5 }
 0x119   : > { %v638_v2 = vmul.f32 %v630_v0, %v565_v13  ;;  %v641_v4 = vpack.c.bf16 %v637_v43, %v635_v40 }
 0x11b   : > { %v642_v3 = vpack.c.bf16 %v638_v2, %v636_v52 }
 0x11d   : > { %818 = vmatprep.mubr.bf16.mxu1 %v642_v3 }
 0x11e   : > { %819 = vmatmul.mubr.bf16.gmra.mxu1 %v641_v4 }
 0x1d6   : > { %v1097_v6 = vpop.f32.mrf.mxu1 }
 0x1d8   : > { %v1098_v7 = vpop.f32.mrf.mxu1 }
 0x1d9   : > { %v1099_v10 = vadd.f32 %v1098_v7, %v1097_v6 }
 0x1da   : > { %v1100_v11 = vpop.f32.mrf.mxu1 }
 0x1db   : > { %v813_v5 = vadd.f32 %v1099_v10, %v1056_v8 }
 0x1dc   : > { %v1101_v1 = vpop.f32.mrf.mxu1 }
 0x1dd   : > { %v855_v13 = vmul.f32 %v838_v9, %v813_v5  ;;  %v1102_v14 = vadd.f32 %v1101_v1, %v1100_v11 }
 0x1de   : > { %v1103_v58 = vpop.f32.mrf.mxu1 }
 0x1df   : > { %v859_v16 = vadd.f32 %v855_v13, %v827_v12  ;;  %v816_v17 = vadd.f32 %v1102_v14, %v1056_v8 }
 0x1e0   : > { %v1104_v19 = vpop.f32.mrf.mxu1 }
 0x1e1   : > { %863 = vst.msk [vmem:[#allocation2] sm:$0xff] %vm507_vm1, %v859_v16  ;;  %v856_v20 = vmul.f32 %v843_v15, %v816_v17  ;;  %v1105_v21 = vadd.f32 %v1104_v19, %v1103_v58 }
 0x1e2   : > { %v1106_v23 = vpop.f32.mrf.mxu1 }
 0x1e3   : > { %v860_v24 = vadd.f32 %v856_v20, %v828_v18  ;;  %v821_v25 = vadd.f32 %v1105_v21, %v1056_v8 }
 0x1e4   : > { %v1107_v27 = vpop.f32.mrf.mxu1 }
 0x1e5   : > { %864 = vst.msk [vmem:[#allocation2 + $0x8] sm:$0xff] %vm507_vm1, %v860_v24  ;;  %v857_v28 = vmul.f32 %v848_v22, %v821_v25  ;;  %v1108_v29 = vadd.f32 %v1107_v27, %v1106_v23 }
 0x1e7   : > { %v861_v30 = vadd.f32 %v857_v28, %v829_v26  ;;  %v824_v31 = vadd.f32 %v1108_v29, %v1056_v8 }
 0x1e9   : > { %865 = vst.msk [vmem:[#allocation2 + $0x10] sm:$0xff] %vm507_vm1, %v861_v30  ;;  %v858_v34 = vmul.f32 %v853_v32, %v824_v31  ;;  %870 = sbr.rel (%p1073_p6) target bundleno = 504 (0x1f8), region = 56 }
 0x1eb   : > { %v862_v35 = vadd.f32 %v858_v34, %v830_v33 }
 0x1ed   : > { %866 = vst.msk [vmem:[#allocation2 + $0x18] sm:$0xff] %vm507_vm1, %v862_v35 }
 0x1ee   : > { %v871_v36 = vld [vmem:[%s1435_s0] sm:$0xff]  ;;  %v872_v38 = vld [vmem:[%s1435_s0 + $0x8] sm:$0xff]  ;;  %v873_v42 = vld [vmem:[%s1435_s0 + $0x10] sm:$0xff] }
 0x1ef   : > { %v875_v37 = vld [vmem:[#allocation2] sm:$0xff]  ;;  %v876_v41 = vld [vmem:[#allocation2 + $0x8] sm:$0xff]  ;;  %v874_v48 = vld [vmem:[%s1435_s0 + $0x18] sm:$0xff] }
 0x1f0   : > { %v879_v39 = vadd.f32 %v875_v37, %v871_v36  ;;  %v877_v44 = vld [vmem:[#allocation2 + $0x10] sm:$0xff]  ;;  %v880_v45 = vadd.f32 %v876_v41, %v872_v38 }
 0x1f1   : > { %v881_v46 = vadd.f32 %v877_v44, %v873_v42 }
 0x1f2   : > { %883 = vst.msk [vmem:[%s1442_s7] sm:$0xff] %vm507_vm1, %v879_v39  ;;  %884 = vst.msk [vmem:[%s1442_s7 + $0x8] sm:$0xff] %vm507_vm1, %v880_v45 }
 0x1f3   : > { %885 = vst.msk [vmem:[%s1442_s7 + $0x10] sm:$0xff] %vm507_vm1, %v881_v46 }
 0x1f4   : > { %v878_v49 = vld [vmem:[#allocation2 + $0x18] sm:$0xff] }
 0x1f5   : > { %v882_v50 = vadd.f32 %v878_v49, %v874_v48 }
 0x1f7   : > { %886 = vst.msk [vmem:[%s1442_s7 + $0x18] sm:$0xff] %vm507_vm1, %v882_v50 }
 0x1f8 PF: > { %s17_s26 = sadd.s32 1, %s1205_s26   ;;  %s1443_s24 = smov %s1201_s25 }
 0x1f9   : > { %p14_p7 = scmp.ge.s32.totalorder %s17_s26, 8   ;;  %s1444_s25 = smov %s1446_s27 }
 0x1fb   :  { %16 = sbr.rel (!%p14_p7) target bundleno = 2 (0x2), region = 104 }

// kernel: multimodal_moe_forward.10
= control target key start
LH: loop header
LB: loop body
LE: loop exit
PB: predicated region body
PF: predicated region fallthrough
CT: control target
= control target key end

     0   :  { %vm31_vm0 = vcmask 523264   ;;  %v610_v29 = vmov 0   ;;  %s847_s0 = inlined_call_operand.vmem [shape: f32[32,64], index: 0, kind: input, shape index: {}]   ;;  %s848_s3 = inlined_call_operand.vmem [shape: bf16[64,256], index: 3, kind: input, shape index: {}]   ;;  %s849_s1 = inlined_call_operand.vmem [shape: f32[1,64], index: 1, kind: input, shape index: {}]   ;;  %s850_s2 = inlined_call_operand.vmem [shape: f32[1,64], index: 2, kind: input, shape index: {}]   ;;  %s851_s5 = inlined_call_operand.vmem [shape: bf16[256,64], index: 5, kind: input, shape index: {}]   ;;  %s852_s4 = inlined_call_operand.vmem [shape: f32[1,256], index: 4, kind: input, shape index: {}]   ;;  %s853_s6 = inlined_call_operand.vmem [shape: f32[1,64], index: 6, kind: input, shape index: {}]   ;;  %s854_s7 = inlined_call_operand.vmem [shape: f32[32,64], index: 7, kind: output, shape index: {}]  }
   0x1   :  { %v654_v0 = vld [vmem:[%s847_s0] sm:$0xff]  ;;  %v659_v1 = vld [vmem:[%s847_s0 + $0x10] sm:$0xff]  ;;  %v664_v2 = vld [vmem:[%s847_s0 + $0x8] sm:$0xff]  ;;  %207 = vmatprep.mubr.bf16.mxu0 %v610_v29 }
   0x2   :  { %v32_v3 = vsel %vm31_vm0, %v654_v0, 0.0  ;;  %v38_v4 = vsel %vm31_vm0, %v659_v1, 0.0  ;;  %v673_v5 = vld [vmem:[%s847_s0 + $0x18] sm:$0xff]  ;;  %v35_v6 = vsel %vm31_vm0, %v664_v2, 0.0  ;;  %v561_v31 = vld [vmem:[%s848_s3 + $0x24] ss:$8 sps:$4 sm:$0xff]  }
   0x3   :  { %33 = vadd.xlane.f32.xlu0 %v32_v3  ;;  %39 = vadd.xlane.f32.xlu1 %v38_v4  ;;  %v41_v7 = vsel %vm31_vm0, %v673_v5, 0.0  ;;  %v558_v28 = vld [vmem:[%s848_s3 + $0x34] ss:$8 sps:$4 sm:$0xff]   ;;  %v560_v30 = vld [vmem:[%s848_s3 + $0x30] ss:$8 sps:$4 sm:$0xff]  }
   0x4   :  { %183 = vmatprep.subr.bf16.mxu0 %v558_v28  ;;  %v563_v32 = vld [vmem:[%s848_s3 + $0x20] ss:$8 sps:$4 sm:$0xff]   ;;  %v564_v33 = vld [vmem:[%s848_s3 + $0x14] ss:$8 sps:$4 sm:$0xff]   ;;  %v566_v34 = vld [vmem:[%s848_s3 + $0x10] ss:$8 sps:$4 sm:$0xff]  }
   0x5   :  { %184 = vmatpush1.bf16.msra.mxu0 %v560_v30  ;;  %v567_v35 = vld [vmem:[%s848_s3 + $0x4] ss:$8 sps:$4 sm:$0xff]   ;;  %v569_v36 = vld [vmem:[%s848_s3] ss:$8 sps:$4 sm:$0xff]  }
   0x6   :  { %185 = vmatprep.subr.bf16.mxu0 %v561_v31  ;;  %v500_v51 = vld [vmem:[%s849_s1] ss:$0 sm:$0xff] }
   0x7   :  { %36 = vadd.xlane.f32.xlu0 %v35_v6  ;;  %42 = vadd.xlane.f32.xlu1 %v41_v7  ;;  %v501_v56 = vld [vmem:[%s850_s2] ss:$0 sm:$0xff] }
   0x8   :  { %v117_v28 = vld [vmem:[%s852_s4] sm:$0x3] }
   0x9   :  { %186 = vmatpush1.bf16.msra.mxu0 %v563_v32 }
   0xa   :  { %187 = vmatprep.subr.bf16.mxu0 %v564_v33 }
   0xd   :  { %188 = vmatpush1.bf16.msra.mxu0 %v566_v34 }
   0xe   :  { %189 = vmatprep.subr.bf16.mxu0 %v567_v35 }
  0x11   :  { %190 = vmatpush1.bf16.msra.mxu0 %v569_v36 }
  0x8c   :  { %v34_v8 = vpop.xlane.xlu0 %33  ;;  %v40_v9 = vpop.xlane.xlu1 %39 }
  0x8d   :  { %v45_v10 = vmul.f32 0.015625, %v34_v8  ;;  %v47_v11 = vmul.f32 0.015625, %v40_v9  ;;  %v570_v9 = vld [vmem:[%s851_s5 + $0x78] sm:$0xff]  }
  0x8e   :  { %529 = vmatprep.subr.bf16.mxu1 %v570_v9 }
  0x8f   :  { %v49_v12 = vsub.f32 %v654_v0, %v45_v10  ;;  %v681_v13 = vsub.f32 %v659_v1, %v47_v11  ;;  %v571_v10 = vld [vmem:[%s851_s5 + $0x38] sm:$0xff]   ;;  %v572_v11 = vld [vmem:[%s851_s5 + $0x70] sm:$0xff]  }
  0x90   :  { %v37_v14 = vpop.xlane.xlu0 %36  ;;  %v43_v15 = vpop.xlane.xlu1 %42  ;;  %530 = vmatpush3.bf16.msra.mxu1 %v571_v10 }
  0x91   :  { %v46_v16 = vmul.f32 0.015625, %v37_v14  ;;  %v48_v17 = vmul.f32 0.015625, %v43_v15  ;;  %v53_v18 = vmul.f32 %v49_v12, %v49_v12  ;;  %v55_v19 = vmul.f32 %v681_v13, %v681_v13  ;;  %531 = vmatprep.subr.bf16.mxu1 %v572_v11  ;;  %v575_v14 = vld [vmem:[%s851_s5 + $0x28] sm:$0xff]   ;;  %v576_v15 = vld [vmem:[%s851_s5 + $0x60] sm:$0xff]  }
  0x93   :  { %v50_v20 = vsub.f32 %v664_v2, %v46_v16  ;;  %v52_v21 = vsub.f32 %v673_v5, %v48_v17  ;;  %v57_v22 = vsel %vm31_vm0, %v53_v18, 0.0  ;;  %v63_v23 = vsel %vm31_vm0, %v55_v19, 0.0  ;;  %v577_v16 = vld [vmem:[%s851_s5 + $0x20] sm:$0xff]   ;;  %v578_v17 = vld [vmem:[%s851_s5 + $0x58] sm:$0xff]   ;;  %v580_v19 = vld [vmem:[%s851_s5 + $0x50] sm:$0xff]  }
  0x94   :  { %58 = vadd.xlane.f32.xlu0 %v57_v22  ;;  %v579_v18 = vld [vmem:[%s851_s5 + $0x18] sm:$0xff]   ;;  %v583_v22 = vld [vmem:[%s851_s5 + $0x8] sm:$0xff]  }
  0x95   :  { %v54_v24 = vmul.f32 %v50_v20, %v50_v20  ;;  %v56_v25 = vmul.f32 %v52_v21, %v52_v21 }
  0x97   :  { %v60_v26 = vsel %vm31_vm0, %v54_v24, 0.0  ;;  %v66_v27 = vsel %vm31_vm0, %v56_v25, 0.0  ;;  %v585_v24 = vld [vmem:[%s851_s5] sm:$0xff]   ;;  %v119_v25 = vlaneseq }
  0x98   :  { %64 = vadd.xlane.f32.xlu0 %v63_v23  ;;  %61 = vadd.xlane.f32.xlu1 %v60_v26  ;;  %v584_v23 = vld [vmem:[%s851_s5 + $0x40] sm:$0xff]  }
  0x99   :  { %v120_v26 = vshrl.u32 %v119_v25, 7 }
  0x9c   :  { %67 = vadd.xlane.f32.xlu1 %v66_v27  ;;  %v121_v27 = vsub.s32 0, %v120_v26 }
  0x9e   :  { %v122_v30 = vrot.slane %v117_v28, %v121_v27 }
 0x11d   :  { %v59_v37 = vpop.xlane.xlu0 %58 }
 0x11e   :  { %v69_v38 = vmul.f32 0.015625, %v59_v37 }
 0x120   :  { %v73_v39 = vadd.f32 1e-05, %v69_v38 }
 0x121   :  { %v62_v40 = vpop.xlane.xlu1 %61  ;;  %v65_v41 = vpop.xlane.xlu0 %64 }
 0x122   :  { %586 = vrsqrt.f32 %v73_v39  ;;  %v70_v42 = vmul.f32 0.015625, %v62_v40  ;;  %v71_v43 = vmul.f32 0.015625, %v65_v41 }
 0x124   :  { %v74_v44 = vadd.f32 1e-05, %v70_v42  ;;  %v75_v45 = vadd.f32 1e-05, %v71_v43 }
 0x125   :  { %v68_v46 = vpop.xlane.xlu1 %67 }
 0x126   :  { %588 = vrsqrt.f32 %v74_v44  ;;  %v72_v47 = vmul.f32 0.015625, %v68_v46 }
 0x127   :  { %590 = vrsqrt.f32 %v75_v45 }
 0x128   :  { %v76_v48 = vadd.f32 1e-05, %v72_v47 }
 0x12a   :  { %592 = vrsqrt.f32 %v76_v48 }
 0x12f   :  { %v587_v49 = vpop.eup %586 }
 0x130   :  { %v81_v50 = vmul.f32 %v587_v49, %v49_v12  ;;  %v573_v12 = vld [vmem:[%s851_s5 + $0x30] sm:$0xff]  }
 0x131   :  { %532 = vmatpush3.bf16.msra.mxu1 %v573_v12 }
 0x132   :  { %v92_v54 = vmul.f32 %v500_v51, %v81_v50 }
 0x133   :  { %v589_v52 = vpop.eup %588 }
 0x134   :  { %v82_v53 = vmul.f32 %v589_v52, %v50_v20  ;;  %v591_v55 = vpop.eup %590  ;;  %v103_v59 = vadd.f32 %v501_v56, %v92_v54  ;;  %v581_v20 = vld [vmem:[%s851_s5 + $0x10] sm:$0xff]  }
 0x135   :  { %v83_v61 = vmul.f32 %v591_v55, %v681_v13  ;;  %v574_v13 = vld [vmem:[%s851_s5 + $0x68] sm:$0xff]  }
 0x136   :  { %v93_v57 = vmul.f32 %v500_v51, %v82_v53  ;;  %533 = vmatprep.subr.bf16.mxu1 %v574_v13 }
 0x137   :  { %v593_v58 = vpop.eup %592  ;;  %v94_v4 = vmul.f32 %v500_v51, %v83_v61  ;;  %534 = vmatpush3.bf16.msra.mxu1 %v575_v14 }
 0x138   :  { %v104_v60 = vadd.f32 %v501_v56, %v93_v57  ;;  %v84_v62 = vmul.f32 %v593_v58, %v52_v21  ;;  %535 = vmatprep.subr.bf16.mxu1 %v576_v15  ;;  %v582_v21 = vld [vmem:[%s851_s5 + $0x48] sm:$0xff]  }
 0x139   :  { %v105_v7 = vadd.f32 %v501_v56, %v94_v4 }
 0x13a   :  { %v107_v63 = vpack.c.bf16 %v104_v60, %v103_v59  ;;  %v95_v3 = vmul.f32 %v500_v51, %v84_v62 }
 0x13b   :  { %536 = vmatpush3.bf16.msra.mxu1 %v577_v16 }
 0x13c   :  { %510 = vmatmul.mubr.msk.bf16.vlgmr.msra.gmra.mxu0 %vm31_vm0, %v107_v63  ;;  %v106_v6 = vadd.f32 %v501_v56, %v95_v3  ;;  %537 = vmatprep.subr.bf16.mxu1 %v578_v17 }
 0x13d   :  { %217 = vmatprep.mubr.bf16.mxu0 %v610_v29  ;;  %v125_v29 = vsub.s32 1, %v120_v26 }
 0x13e   :  { %v108_v8 = vpack.c.bf16 %v106_v6, %v105_v7 }
 0x13f   :  { %538 = vmatpush3.bf16.msra.mxu1 %v579_v18  ;;  %v126_v31 = vrot.slane %v117_v28, %v125_v29 }
 0x140   :  { %539 = vmatprep.subr.bf16.mxu1 %v580_v19 }
 0x143   :  { %540 = vmatpush3.bf16.msra.mxu1 %v581_v20 }
 0x144   :  { %511 = vmatmul.mubr.msk.bf16.gmra.mxu0 %vm31_vm0, %v108_v8  ;;  %541 = vmatprep.subr.bf16.mxu1 %v582_v21 }
 0x147   :  { %542 = vmatpush3.bf16.msra.mxu1 %v583_v22 }
 0x148   :  { %543 = vmatprep.subr.bf16.mxu1 %v584_v23 }
 0x14b   :  { %544 = vmatpush3.bf16.msra.mxu1 %v585_v24 }
 0x1fc   :  { %v209_v32 = vpop.f32.mrf.mxu0 }
 0x1fd   :  { %v775_v33 = vadd.f32 %v209_v32, %v122_v30 }
 0x1fe   :  { %v211_v34 = vpop.f32.mrf.mxu0 }
 0x1ff   :  { %v228_v35 = vmul.f32 %v775_v33, %v775_v33  ;;  %v779_v36 = vadd.f32 %v211_v34, %v126_v31 }
 0x200   :  { %v213_v37 = vpop.f32.mrf.mxu0 }
 0x201   :  { %v236_v38 = vmul.f32 %v228_v35, %v775_v33  ;;  %v229_v39 = vmul.f32 %v779_v36, %v779_v36  ;;  %v784_v40 = vadd.f32 %v213_v37, %v122_v30 }
 0x202   :  { %v215_v41 = vpop.f32.mrf.mxu0 }
 0x203   :  { %v244_v42 = vmul.f32 0.044715, %v236_v38  ;;  %v237_v43 = vmul.f32 %v229_v39, %v779_v36  ;;  %v230_v44 = vmul.f32 %v784_v40, %v784_v40  ;;  %v789_v45 = vadd.f32 %v215_v41, %v126_v31 }
 0x204   :  { %v219_v46 = vpop.f32.mrf.mxu0 }
 0x205   :  { %v252_v47 = vadd.f32 %v244_v42, %v775_v33  ;;  %v245_v48 = vmul.f32 0.044715, %v237_v43  ;;  %v238_v49 = vmul.f32 %v230_v44, %v784_v40  ;;  %v231_v50 = vmul.f32 %v789_v45, %v789_v45 }
 0x206   :  { %v795_v51 = vadd.f32 %v219_v46, %v122_v30  ;;  %v221_v52 = vpop.f32.mrf.mxu0 }
 0x207   :  { %v260_v53 = vmul.f32 0.7978846, %v252_v47  ;;  %v253_v54 = vadd.f32 %v245_v48, %v779_v36  ;;  %v246_v55 = vmul.f32 0.044715, %v238_v49  ;;  %v239_v56 = vmul.f32 %v231_v50, %v789_v45 }
 0x208   :  { %v232_v57 = vmul.f32 %v795_v51, %v795_v51  ;;  %v801_v58 = vadd.f32 %v221_v52, %v126_v31  ;;  %v223_v59 = vpop.f32.mrf.mxu0 }
 0x209   :  { %v254_v60 = vadd.f32 %v246_v55, %v784_v40  ;;  %v247_v61 = vmul.f32 0.044715, %v239_v56  ;;  %v804_v62 = vadd.f32 %v223_v59, %v122_v30  ;;  %594 = vtanh.f32 %v260_v53 }
 0x20a   :  { %v240_v63 = vmul.f32 %v232_v57, %v795_v51  ;;  %v233_v3 = vmul.f32 %v801_v58, %v801_v58  ;;  %v225_v4 = vpop.f32.mrf.mxu0  ;;  %v261_v6 = vmul.f32 0.7978846, %v253_v54 }
 0x20b   :  { %v262_v7 = vmul.f32 0.7978846, %v254_v60  ;;  %v255_v8 = vadd.f32 %v247_v61, %v789_v45  ;;  %v234_v9 = vmul.f32 %v804_v62, %v804_v62  ;;  %v226_v10 = vadd.f32 %v225_v4, %v126_v31 }
 0x20c   :  { %v248_v11 = vmul.f32 0.044715, %v240_v63  ;;  %v241_v12 = vmul.f32 %v233_v3, %v801_v58  ;;  %596 = vtanh.f32 %v261_v6 }
 0x20d   :  { %598 = vtanh.f32 %v262_v7  ;;  %v242_v13 = vmul.f32 %v234_v9, %v804_v62  ;;  %v235_v14 = vmul.f32 %v226_v10, %v226_v10  ;;  %v263_v15 = vmul.f32 0.7978846, %v255_v8  ;;  %v512_v8 = vld [vmem:[%s853_s6] ss:$0 sm:$0xff] }
 0x20e   :  { %v256_v16 = vadd.f32 %v248_v11, %v795_v51  ;;  %v249_v17 = vmul.f32 0.044715, %v241_v12 }
 0x20f   :  { %v250_v18 = vmul.f32 0.044715, %v242_v13  ;;  %v243_v19 = vmul.f32 %v235_v14, %v226_v10  ;;  %600 = vtanh.f32 %v263_v15 }
 0x210   :  { %v264_v20 = vmul.f32 0.7978846, %v256_v16  ;;  %v257_v21 = vadd.f32 %v249_v17, %v801_v58 }
 0x211   :  { %v258_v22 = vadd.f32 %v250_v18, %v804_v62  ;;  %v251_v23 = vmul.f32 0.044715, %v243_v19 }
 0x212   :  { %602 = vtanh.f32 %v264_v20  ;;  %v265_v24 = vmul.f32 0.7978846, %v257_v21 }
 0x213   :  { %v266_v25 = vmul.f32 0.7978846, %v258_v22  ;;  %v259_v26 = vadd.f32 %v251_v23, %v226_v10 }
 0x214   :  { %604 = vtanh.f32 %v265_v24 }
 0x215   :  { %606 = vtanh.f32 %v266_v25  ;;  %v267_v27 = vmul.f32 0.7978846, %v259_v26 }
 0x216   :  { %v595_v28 = vpop.eup %594 }
 0x217   :  { %608 = vtanh.f32 %v267_v27  ;;  %v276_v32 = vadd.f32 1.0, %v595_v28 }
 0x219   :  { %v597_v29 = vpop.eup %596  ;;  %v284_v41 = vmul.f32 0.5, %v276_v32 }
 0x21a   :  { %v599_v30 = vpop.eup %598  ;;  %v277_v31 = vadd.f32 1.0, %v597_v29 }
 0x21b   :  { %v278_v34 = vadd.f32 1.0, %v599_v30  ;;  %v292_v50 = vmul.f32 %v284_v41, %v775_v33 }
 0x21c   :  { %v601_v35 = vpop.eup %600  ;;  %v285_v38 = vmul.f32 0.5, %v277_v31 }
 0x21d   :  { %v279_v37 = vadd.f32 1.0, %v601_v35  ;;  %v286_v39 = vmul.f32 0.5, %v278_v34 }
 0x21e   :  { %v293_v47 = vmul.f32 %v285_v38, %v779_v36 }
 0x21f   :  { %v603_v42 = vpop.eup %602  ;;  %v287_v43 = vmul.f32 0.5, %v279_v37  ;;  %v294_v44 = vmul.f32 %v286_v39, %v784_v40 }
 0x220   :  { %v280_v53 = vadd.f32 1.0, %v603_v42 }
 0x221   :  { %v605_v46 = vpop.eup %604  ;;  %v295_v48 = vmul.f32 %v287_v43, %v789_v45  ;;  %v300_v57 = vpack.c.bf16 %v294_v44, %v292_v50 }
 0x222   :  { %v607_v49 = vpop.eup %606  ;;  %v281_v52 = vadd.f32 1.0, %v605_v46  ;;  %v288_v40 = vmul.f32 0.5, %v280_v53 }
 0x223   :  { %v301_v54 = vpack.c.bf16 %v295_v48, %v293_v47  ;;  %v282_v55 = vadd.f32 1.0, %v607_v49 }
 0x224   :  { %v609_v56 = vpop.eup %608  ;;  %v289_v60 = vmul.f32 0.5, %v281_v52  ;;  %v296_v33 = vmul.f32 %v288_v40, %v795_v51 }
 0x225   :  { %471 = vmatprep.mubr.bf16.mxu1 %v301_v54  ;;  %v283_v59 = vadd.f32 1.0, %v609_v56  ;;  %v290_v61 = vmul.f32 0.5, %v282_v55 }
 0x226   :  { %472 = vmatmul.mubr.bf16.vlgmr.msra.gmra.mxu1 %v300_v57  ;;  %v297_v45 = vmul.f32 %v289_v60, %v801_v58 }
 0x227   :  { %v291_v63 = vmul.f32 0.5, %v283_v59  ;;  %v298_v36 = vmul.f32 %v290_v61, %v804_v62 }
 0x229   :  { %v299_v3 = vmul.f32 %v291_v63, %v226_v10  ;;  %v302_v6 = vpack.c.bf16 %v298_v36, %v296_v33 }
 0x22b   :  { %v303_v4 = vpack.c.bf16 %v299_v3, %v297_v45 }
 0x22d   :  { %479 = vmatprep.mubr.bf16.mxu1 %v303_v4 }
 0x22e   :  { %480 = vmatmul.mubr.bf16.gmra.mxu1 %v302_v6 }
 0x2e6   :  { %v545_v7 = vpop.f32.mrf.mxu1 }
 0x2e8   :  { %v546_v9 = vpop.f32.mrf.mxu1 }
 0x2e9   :  { %v547_v11 = vadd.f32 %v546_v9, %v545_v7 }
 0x2ea   :  { %v548_v12 = vpop.f32.mrf.mxu1 }
 0x2eb   :  { %v474_v13 = vadd.f32 %v547_v11, %v512_v8 }
 0x2ec   :  { %v549_v14 = vpop.f32.mrf.mxu1 }
 0x2ed   :  { %v488_v62 = vadd.f32 %v474_v13, %v654_v0  ;;  %v550_v58 = vadd.f32 %v549_v14, %v548_v12 }
 0x2ee   :  { %v551_v10 = vpop.f32.mrf.mxu1 }
 0x2ef   :  { %492 = vst.msk [vmem:[%s854_s7] sm:$0xff] %vm31_vm0, %v488_v62  ;;  %v477_v51 = vadd.f32 %v550_v58, %v512_v8 }
 0x2f0   :  { %v552_v15 = vpop.f32.mrf.mxu1 }
 0x2f1   :  { %v489_v16 = vadd.f32 %v477_v51, %v664_v2  ;;  %v553_v17 = vadd.f32 %v552_v15, %v551_v10 }
 0x2f2   :  { %v554_v18 = vpop.f32.mrf.mxu1 }
 0x2f3   :  { %493 = vst.msk [vmem:[%s854_s7 + $0x8] sm:$0xff] %vm31_vm0, %v489_v16  ;;  %v482_v19 = vadd.f32 %v553_v17, %v512_v8 }
 0x2f4   :  { %v555_v0 = vpop.f32.mrf.mxu1 }
 0x2f5   :  { %v490_v20 = vadd.f32 %v482_v19, %v659_v1  ;;  %v556_v21 = vadd.f32 %v555_v0, %v554_v18 }
 0x2f7   :  { %494 = vst.msk [vmem:[%s854_s7 + $0x10] sm:$0xff] %vm31_vm0, %v490_v20  ;;  %v485_v22 = vadd.f32 %v556_v21, %v512_v8 }
 0x2f9   :  { %v491_v2 = vadd.f32 %v485_v22, %v673_v5 }
 0x2fb   :  { %495 = vst.msk [vmem:[%s854_s7 + $0x18] sm:$0xff] %vm31_vm0, %v491_v2 }

</bundles_post_ra>
